<compile_context>
chip_gen: v7x
topology: tpu7x:2x2x1
jax: 0.10.0
libtpu: 0.0.40
codegen_flags: <defaults>
</compile_context>

<pallas_src>
import functools

import jax
import jax.numpy as jnp
from jax.experimental import pallas as pl
from jax.experimental.pallas import tpu as pltpu


# ----------------------------------------------------------------------------
# Fused PNet kernel (one grid step per batch element)
# ----------------------------------------------------------------------------
def _pnet_fused_kernel(xcol_ref, w1_ref, b1_ref, al1_ref,
                       w2_ref, b2_ref, al2_ref,
                       w3_ref, b3_ref, al3_ref,
                       wh_ref, bh_ref,
                       out_ref, a1_ref, p1_ref, a2_ref, *, g):
    f32 = jnp.float32
    Ho1, Wo1, Hd, Wd = g['Ho1'], g['Wo1'], g['Hd'], g['Wd']
    Hp, Wp, P = g['Hp'], g['Wp'], g['P']
    rows2, rows3 = g['rows2'], g['rows3']

    # ---- conv1 + PReLU: one wide-K (K = 9*Cin) MXU matmul on the im2col slab.
    y1 = jnp.dot(xcol_ref[0, :, :], w1_ref[...],
                 preferred_element_type=f32) + b1_ref[0, :]
    y1 = jnp.where(y1 > 0, y1, y1 * al1_ref[0, :])

    if Hd == Ho1 and Wd == Wo1:
        a1_ref[...] = y1                          # compact slab, pitch = Wd
    else:
        # ceil_mode overhang: -inf pad cells, valid rows placed at pitch Wd.
        a1_ref[...] = jnp.full(a1_ref.shape, -jnp.inf, f32)
        for h in range(Ho1):
            a1_ref[pl.ds(h * Wd, Wo1), :] = y1[h * Wo1:(h + 1) * Wo1, :]

    # ---- pool1: MaxPool2d(2, 2, ceil_mode=True).  Only the strided output
    # positions are read (stride-2 sublane loads); rows are written back
    # compacted at an 8-aligned pitch P.
    p1_ref[...] = jnp.zeros(p1_ref.shape, f32)    # keep pad rows deterministic
    for hp in range(Hp):
        row_max = None
        for kh in range(2):
            base = (2 * hp + kh) * Wd
            for kw in range(2):
                v = a1_ref[pl.ds(base + kw, Wp, stride=2), :]
                row_max = v if row_max is None else jnp.maximum(row_max, v)
        p1_ref[pl.ds(hp * P, Wp), :] = row_max

    # ---- conv2 + PReLU: 9 shifted-slab matmuls (pitch = P), accumulator
    # seeded with the first tap.
    acc = None
    for kh in range(3):
        for kw in range(3):
            t = jnp.dot(p1_ref[pl.ds(kh * P + kw, rows2), :],
                        w2_ref[kh * 3 + kw], preferred_element_type=f32)
            acc = t if acc is None else acc + t
    y2 = acc + b2_ref[0, :]
    a2_ref[...] = jnp.where(y2 > 0, y2, y2 * al2_ref[0, :])

    # ---- conv3 + PReLU: 9 shifted-slab matmuls (same pitch).
    acc = None
    for kh in range(3):
        for kw in range(3):
            t = jnp.dot(a2_ref[pl.ds(kh * P + kw, rows3), :],
                        w3_ref[kh * 3 + kw], preferred_element_type=f32)
            acc = t if acc is None else acc + t
    y3 = acc + b3_ref[0, :]
    y3 = jnp.where(y3 > 0, y3, y3 * al3_ref[0, :])

    # ---- merged 1x1 heads (conv4_1 | conv4_2) + softmax over the first Na
    # lanes (conv4_1 channels), done with a lane mask (no lane slicing).
    logits = jnp.dot(y3, wh_ref[...], preferred_element_type=f32) + bh_ref[0, :]
    lane = jax.lax.broadcasted_iota(jnp.int32, logits.shape, 1)
    is_a = lane < g['Na']
    m = jnp.max(jnp.where(is_a, logits, -jnp.inf), axis=-1, keepdims=True)
    e = jnp.exp(jnp.where(is_a, logits - m, 0.0))
    denom = jnp.sum(jnp.where(is_a, e, 0.0), axis=-1, keepdims=True)
    out_ref[0, :, :] = jnp.where(is_a, e / denom, logits)


# ----------------------------------------------------------------------------
# Wrapper: static geometry, conv1 im2col, one pallas_call, output extraction
# ----------------------------------------------------------------------------
def pnet_forward(x_nchw, q):
    """Fused Pallas PNet forward. x_nchw: (B,3,H,W) like PyTorch; returns (b, a) NCHW."""
    B, Cin, H, W = x_nchw.shape
    x = jnp.transpose(x_nchw, (0, 2, 3, 1)).astype(jnp.float32)   # NHWC

    # Static geometry (Python ints).
    Ho1, Wo1 = H - 2, W - 2                      # conv1 (k=3, VALID)
    Hp = -(-(Ho1 - 2) // 2) + 1                  # pool1 (2,2, ceil_mode=True)
    Wp = -(-(Wo1 - 2) // 2) + 1
    Hd = (Hp - 1) * 2 + 2                        # padded extent for ceil windows
    Wd = (Wp - 1) * 2 + 2
    P = -(-Wp // 8) * 8                          # pool-output pitch, 8-aligned
    Ho2, Wo2 = Hp - 2, Wp - 2                    # conv2 (k=3)
    Ho3, Wo3 = Ho2 - 2, Wo2 - 2                  # conv3 (k=3)
    rows_p1 = (Hp - 1) * P + Wp
    rows2 = (Ho2 - 1) * P + Wo2
    rows3 = (Ho3 - 1) * P + Wo3
    C1 = q['w1'].shape[1]
    C2 = q['w2'].shape[2]
    C3 = q['w3'].shape[2]
    Nh = q['wh'].shape[1]
    Na = 2

    # Wrapper-side im2col for conv1 -> single K = 9*Cin MXU contraction.
    cols = [x[:, kh:kh + Ho1, kw:kw + Wo1, :]
            for kh in range(3) for kw in range(3)]
    xcol = jnp.concatenate(cols, axis=-1).reshape(B, Ho1 * Wo1, 9 * Cin)

    g = dict(Ho1=Ho1, Wo1=Wo1, Hd=Hd, Wd=Wd, Hp=Hp, Wp=Wp, P=P,
             rows2=rows2, rows3=rows3, C2=C2, C3=C3, Na=Na)
    kern = functools.partial(_pnet_fused_kernel, g=g)

    out = pl.pallas_call(
        kern,
        out_shape=jax.ShapeDtypeStruct((B, rows3, Nh), jnp.float32),
        grid=(B,),
        in_specs=[
            pl.BlockSpec((1, Ho1 * Wo1, 9 * Cin), lambda i: (i, 0, 0)),
            pl.BlockSpec(q['w1'].shape, lambda i: (0, 0)),
            pl.BlockSpec(q['b1'].shape, lambda i: (0, 0)),
            pl.BlockSpec(q['al1'].shape, lambda i: (0, 0)),
            pl.BlockSpec(q['w2'].shape, lambda i: (0, 0, 0)),
            pl.BlockSpec(q['b2'].shape, lambda i: (0, 0)),
            pl.BlockSpec(q['al2'].shape, lambda i: (0, 0)),
            pl.BlockSpec(q['w3'].shape, lambda i: (0, 0, 0)),
            pl.BlockSpec(q['b3'].shape, lambda i: (0, 0)),
            pl.BlockSpec(q['al3'].shape, lambda i: (0, 0)),
            pl.BlockSpec(q['wh'].shape, lambda i: (0, 0)),
            pl.BlockSpec(q['bh'].shape, lambda i: (0, 0)),
        ],
        out_specs=pl.BlockSpec((1, rows3, Nh), lambda i: (i, 0, 0)),
        scratch_shapes=[
            pltpu.VMEM((Hd * Wd, C1), jnp.float32),    # conv1 slab (pool input)
            pltpu.VMEM((rows_p1, C1), jnp.float32),    # pool1 slab (pitch P)
            pltpu.VMEM((rows2, C2), jnp.float32),      # conv2 slab
        ],
        compiler_params=pltpu.CompilerParams(
            dimension_semantics=("parallel",)),
    )(xcol, q['w1'], q['b1'], q['al1'],
      q['w2'], q['b2'], q['al2'],
      q['w3'], q['b3'], q['al3'],
      q['wh'], q['bh'])

    # Extract the Ho3 x Wo3 valid positions, split the two heads, go to NCHW.
    pad = Ho3 * P - rows3
    val = jnp.pad(out, ((0, 0), (0, pad), (0, 0)))
    val = val.reshape(B, Ho3, P, Nh)[:, :, :Wo3, :]
    a = jnp.transpose(val[..., :Na], (0, 3, 1, 2))   # softmax(conv4_1): (B,2,Ho3,Wo3)
    b = jnp.transpose(val[..., Na:], (0, 3, 1, 2))   # conv4_2:          (B,4,Ho3,Wo3)
    return b, a


# ----------------------------------------------------------------------------
# Parameter preparation (weight re-layouts hoisted out of the jitted forward)
# ----------------------------------------------------------------------------
def prepare_params(p):
    def taps(w):  # (Cout,Cin,KH,KW) -> (KH*KW, Cin, Cout)
        co, ci, kh, kw = w.shape
        return jnp.transpose(w, (2, 3, 1, 0)).reshape(kh * kw, ci, co)

    co1, ci1, kh1, kw1 = p['conv1_w'].shape
    return {
        'w1':  jnp.transpose(p['conv1_w'], (2, 3, 1, 0)).reshape(kh1 * kw1 * ci1, co1),
        'b1':  p['conv1_b'].reshape(1, -1),
        'al1': p['prelu1'].reshape(1, -1),
        'w2':  taps(p['conv2_w']),
        'b2':  p['conv2_b'].reshape(1, -1),
        'al2': p['prelu2'].reshape(1, -1),
        'w3':  taps(p['conv3_w']),
        'b3':  p['conv3_b'].reshape(1, -1),
        'al3': p['prelu3'].reshape(1, -1),
        'wh':  jnp.concatenate([p['conv4_1_w'].reshape(p['conv4_1_w'].shape[0], -1).T,
                                p['conv4_2_w'].reshape(p['conv4_2_w'].shape[0], -1).T],
                               axis=1),            # (32, 2+4)
        'bh':  jnp.concatenate([p['conv4_1_b'], p['conv4_2_b']]).reshape(1, -1),
    }


# ----------------------------------------------------------------------------
# Deterministic synthetic parameters (PyTorch-shaped) + pure-JAX reference
# ----------------------------------------------------------------------------
def init_params(key):
    # TODO(synk): pretrained pnet.pt weight loading (file I/O) is replaced by
    # deterministic synthetic parameters with the same shapes.
    ks = jax.random.split(key, 13)

    def w(k, shape, fan_in):
        return jax.random.normal(k, shape, jnp.float32) / jnp.sqrt(float(fan_in))

    def bias(k, n):
        return 0.01 * jax.random.normal(k, (n,), jnp.float32)

    def slope(k, n):
        return 0.1 + 0.2 * jax.random.uniform(k, (n,), jnp.float32)

    p = {}
    p['conv1_w'] = w(ks[0], (10, 3, 3, 3), 27);    p['conv1_b'] = bias(ks[1], 10)
    p['prelu1'] = slope(ks[2], 10)
    p['conv2_w'] = w(ks[3], (16, 10, 3, 3), 90);   p['conv2_b'] = bias(ks[4], 16)
    p['prelu2'] = slope(ks[5], 16)
    p['conv3_w'] = w(ks[6], (32, 16, 3, 3), 144);  p['conv3_b'] = bias(ks[7], 32)
    p['prelu3'] = slope(ks[8], 32)
    p['conv4_1_w'] = w(ks[9], (2, 32, 1, 1), 32);  p['conv4_1_b'] = bias(ks[10], 2)
    p['conv4_2_w'] = w(ks[11], (4, 32, 1, 1), 32); p['conv4_2_b'] = bias(ks[12], 4)
    return p


def reference_forward(x_nchw, p):
    x = jnp.transpose(x_nchw, (0, 2, 3, 1)).astype(jnp.float32)

    def conv(x, w, b, a=None):
        y = jax.lax.conv_general_dilated(
            x, jnp.transpose(w, (2, 3, 1, 0)), (1, 1), 'VALID',
            dimension_numbers=('NHWC', 'HWIO', 'NHWC')) + b
        return y if a is None else jnp.where(y > 0, y, y * a)

    def pool(x, k, s):
        B, H, W, C = x.shape
        Hp = -(-(H - k) // s) + 1
        Wp = -(-(W - k) // s) + 1
        ph = (Hp - 1) * s + k - H
        pw = (Wp - 1) * s + k - W
        return jax.lax.reduce_window(
            x, -jnp.inf, jax.lax.max, (1, k, k, 1), (1, s, s, 1),
            ((0, 0), (0, ph), (0, pw), (0, 0)))

    x = conv(x, p['conv1_w'], p['conv1_b'], p['prelu1'])
    x = pool(x, 2, 2)
    x = conv(x, p['conv2_w'], p['conv2_b'], p['prelu2'])
    x = conv(x, p['conv3_w'], p['conv3_b'], p['prelu3'])
    a = jax.nn.softmax(conv(x, p['conv4_1_w'], p['conv4_1_b']), axis=-1)
    b = conv(x, p['conv4_2_w'], p['conv4_2_b'])
    return jnp.transpose(b, (0, 3, 1, 2)), jnp.transpose(a, (0, 3, 1, 2))


if __name__ == "__main__":
    key = jax.random.PRNGKey(0)
    kx, kp = jax.random.split(key)
    params = init_params(kp)
    prepared = prepare_params(params)       # re-layouts done once, outside jit
    x = jax.random.normal(kx, (2, 3, 16, 16), jnp.float32)

    fwd = jax.jit(pnet_forward)
    b, a = fwd(x, prepared)
    jax.block_until_ready((b, a))

    rb, ra = reference_forward(x, params)
    assert b.shape == (2, 4, 3, 3) and a.shape == (2, 2, 3, 3)
    assert jnp.allclose(b, rb, rtol=5e-2, atol=5e-2)
    assert jnp.allclose(a, ra, rtol=5e-2, atol=5e-2)
    assert jnp.allclose(jnp.sum(a, axis=1), 1.0, atol=1e-3)

    print("KERNEL_OK")
</pallas_src>

<mosaic_0001>
module attributes {stable_mosaic.version = 11 : i64} {
  func.func @_pnet_fused_kernel(%arg0: i32, %arg1: memref<1x196x27xf32, #tpu.memory_space<vmem>>, %arg2: memref<27x10xf32, #tpu.memory_space<vmem>>, %arg3: memref<1x10xf32, #tpu.memory_space<vmem>>, %arg4: memref<1x10xf32, #tpu.memory_space<vmem>>, %arg5: memref<9x10x16xf32, #tpu.memory_space<vmem>>, %arg6: memref<1x16xf32, #tpu.memory_space<vmem>>, %arg7: memref<1x16xf32, #tpu.memory_space<vmem>>, %arg8: memref<9x16x32xf32, #tpu.memory_space<vmem>>, %arg9: memref<1x32xf32, #tpu.memory_space<vmem>>, %arg10: memref<1x32xf32, #tpu.memory_space<vmem>>, %arg11: memref<32x6xf32, #tpu.memory_space<vmem>>, %arg12: memref<1x6xf32, #tpu.memory_space<vmem>>, %arg13: memref<1x19x6xf32, #tpu.memory_space<vmem>>, %arg14: memref<196x10xf32, #tpu.memory_space<vmem>>, %arg15: memref<55x10xf32, #tpu.memory_space<vmem>>, %arg16: memref<37x16xf32, #tpu.memory_space<vmem>>) attributes {dimension_semantics = [#tpu.dimension_semantics<parallel>], iteration_bounds = array<i64: 2>, scalar_prefetch = 0 : i64, scratch_operands = 3 : i64, tpu.core_type = #tpu.core_type<tc>, window_params = [{transform_indices = @transform_0, window_bounds = array<i64: 1, 196, 27>}, {pipeline_mode = #tpu.pipeline_mode<synchronous>, transform_indices = @transform_1, window_bounds = array<i64: 27, 10>}, {pipeline_mode = #tpu.pipeline_mode<synchronous>, transform_indices = @transform_2, window_bounds = array<i64: 1, 10>}, {pipeline_mode = #tpu.pipeline_mode<synchronous>, transform_indices = @transform_3, window_bounds = array<i64: 1, 10>}, {pipeline_mode = #tpu.pipeline_mode<synchronous>, transform_indices = @transform_4, window_bounds = array<i64: 9, 10, 16>}, {pipeline_mode = #tpu.pipeline_mode<synchronous>, transform_indices = @transform_5, window_bounds = array<i64: 1, 16>}, {pipeline_mode = #tpu.pipeline_mode<synchronous>, transform_indices = @transform_6, window_bounds = array<i64: 1, 16>}, {pipeline_mode = #tpu.pipeline_mode<synchronous>, transform_indices = @transform_7, window_bounds = array<i64: 9, 16, 32>}, {pipeline_mode = #tpu.pipeline_mode<synchronous>, transform_indices = @transform_8, window_bounds = array<i64: 1, 32>}, {pipeline_mode = #tpu.pipeline_mode<synchronous>, transform_indices = @transform_9, window_bounds = array<i64: 1, 32>}, {pipeline_mode = #tpu.pipeline_mode<synchronous>, transform_indices = @transform_10, window_bounds = array<i64: 32, 6>}, {pipeline_mode = #tpu.pipeline_mode<synchronous>, transform_indices = @transform_11, window_bounds = array<i64: 1, 6>}, {transform_indices = @transform_12, window_bounds = array<i64: 1, 19, 6>}]} {
    %c0 = arith.constant 0 : index
    %c0_0 = arith.constant 0 : index
    %c0_1 = arith.constant 0 : index
    %0 = vector.load %arg1[%c0, %c0_0, %c0_1] : memref<1x196x27xf32, #tpu.memory_space<vmem>>, vector<1x196x27xf32>
    %1 = vector.shape_cast %0 : vector<1x196x27xf32> to vector<196x27xf32>
    %c0_2 = arith.constant 0 : index
    %c0_3 = arith.constant 0 : index
    %2 = vector.load %arg2[%c0_2, %c0_3] : memref<27x10xf32, #tpu.memory_space<vmem>>, vector<27x10xf32>
    %cst = arith.constant dense<0.000000e+00> : vector<196x10xf32>
    %3 = tpu.matmul %1, %2, %cst {dimension_numbers = #tpu.dot_dimension_numbers<[1], [0], [0], [1], [0, 0, 1, 1], [], []>} : vector<196x27xf32>, vector<27x10xf32>, vector<196x10xf32> -> vector<196x10xf32>
    %c0_4 = arith.constant 0 : index
    %c0_5 = arith.constant 0 : index
    %4 = vector.load %arg3[%c0_4, %c0_5] : memref<1x10xf32, #tpu.memory_space<vmem>>, vector<1x10xf32>
    %5 = vector.shape_cast %4 : vector<1x10xf32> to vector<10xf32>
    %6 = vector.shape_cast %5 : vector<10xf32> to vector<1x10xf32>
    %7 = vector.broadcast %6 : vector<1x10xf32> to vector<196x10xf32>
    %8 = arith.addf %3, %7 : vector<196x10xf32>
    %cst_6 = arith.constant 0.000000e+00 : f32
    %9 = vector.broadcast %cst_6 : f32 to vector<196x10xf32>
    %10 = arith.cmpf ogt, %8, %9 : vector<196x10xf32>
    %c0_7 = arith.constant 0 : index
    %c0_8 = arith.constant 0 : index
    %11 = vector.load %arg4[%c0_7, %c0_8] : memref<1x10xf32, #tpu.memory_space<vmem>>, vector<1x10xf32>
    %12 = vector.shape_cast %11 : vector<1x10xf32> to vector<10xf32>
    %13 = vector.shape_cast %12 : vector<10xf32> to vector<1x10xf32>
    %14 = vector.broadcast %13 : vector<1x10xf32> to vector<196x10xf32>
    %15 = arith.mulf %8, %14 : vector<196x10xf32>
    %16 = arith.select %10, %8, %15 : vector<196x10xi1>, vector<196x10xf32>
    %c0_9 = arith.constant 0 : index
    %c0_10 = arith.constant 0 : index
    %17 = vector.load %arg14[%c0_9, %c0_10] : memref<196x10xf32, #tpu.memory_space<vmem>>, vector<196x10xf32>
    tpu.vector_store %arg14[%c0_9, %c0_10], %16 {strides = array<i32>} : memref<196x10xf32, #tpu.memory_space<vmem>>, vector<196x10xf32>,
    %cst_11 = arith.constant 0.000000e+00 : f32
    %18 = vector.broadcast %cst_11 : f32 to vector<55x10xf32>
    %c0_12 = arith.constant 0 : index
    %c0_13 = arith.constant 0 : index
    %19 = vector.load %arg15[%c0_12, %c0_13] : memref<55x10xf32, #tpu.memory_space<vmem>>, vector<55x10xf32>
    tpu.vector_store %arg15[%c0_12, %c0_13], %18 {strides = array<i32>} : memref<55x10xf32, #tpu.memory_space<vmem>>, vector<55x10xf32>,
    %c0_14 = arith.constant 0 : index
    %c0_15 = arith.constant 0 : index
    %20 = tpu.strided_load %arg14[%c0_14, %c0_15] {strides = array<i32: 2, 1>} : memref<196x10xf32, #tpu.memory_space<vmem>>, vector<7x10xf32>
    %c1 = arith.constant 1 : index
    %c0_16 = arith.constant 0 : index
    %21 = tpu.strided_load %arg14[%c1, %c0_16] {strides = array<i32: 2, 1>} : memref<196x10xf32, #tpu.memory_space<vmem>>, vector<7x10xf32>
    %22 = arith.maximumf %20, %21 : vector<7x10xf32>
    %c14 = arith.constant 14 : index
    %c0_17 = arith.constant 0 : index
    %23 = tpu.strided_load %arg14[%c14, %c0_17] {strides = array<i32: 2, 1>} : memref<196x10xf32, #tpu.memory_space<vmem>>, vector<7x10xf32>
    %24 = arith.maximumf %22, %23 : vector<7x10xf32>
    %c15 = arith.constant 15 : index
    %c0_18 = arith.constant 0 : index
    %25 = tpu.strided_load %arg14[%c15, %c0_18] {strides = array<i32: 2, 1>} : memref<196x10xf32, #tpu.memory_space<vmem>>, vector<7x10xf32>
    %26 = arith.maximumf %24, %25 : vector<7x10xf32>
    %c0_19 = arith.constant 0 : index
    %c0_20 = arith.constant 0 : index
    %27 = vector.load %arg15[%c0_19, %c0_20] : memref<55x10xf32, #tpu.memory_space<vmem>>, vector<7x10xf32>
    tpu.vector_store %arg15[%c0_19, %c0_20], %26 {strides = array<i32>} : memref<55x10xf32, #tpu.memory_space<vmem>>, vector<7x10xf32>,
    %c28 = arith.constant 28 : index
    %c0_21 = arith.constant 0 : index
    %28 = tpu.strided_load %arg14[%c28, %c0_21] {strides = array<i32: 2, 1>} : memref<196x10xf32, #tpu.memory_space<vmem>>, vector<7x10xf32>
    %c29 = arith.constant 29 : index
    %c0_22 = arith.constant 0 : index
    %29 = tpu.strided_load %arg14[%c29, %c0_22] {strides = array<i32: 2, 1>} : memref<196x10xf32, #tpu.memory_space<vmem>>, vector<7x10xf32>
    %30 = arith.maximumf %28, %29 : vector<7x10xf32>
    %c42 = arith.constant 42 : index
    %c0_23 = arith.constant 0 : index
    %31 = tpu.strided_load %arg14[%c42, %c0_23] {strides = array<i32: 2, 1>} : memref<196x10xf32, #tpu.memory_space<vmem>>, vector<7x10xf32>
    %32 = arith.maximumf %30, %31 : vector<7x10xf32>
    %c43 = arith.constant 43 : index
    %c0_24 = arith.constant 0 : index
    %33 = tpu.strided_load %arg14[%c43, %c0_24] {strides = array<i32: 2, 1>} : memref<196x10xf32, #tpu.memory_space<vmem>>, vector<7x10xf32>
    %34 = arith.maximumf %32, %33 : vector<7x10xf32>
    %c8 = arith.constant 8 : index
    %c0_25 = arith.constant 0 : index
    %35 = vector.load %arg15[%c8, %c0_25] : memref<55x10xf32, #tpu.memory_space<vmem>>, vector<7x10xf32>
    tpu.vector_store %arg15[%c8, %c0_25], %34 {strides = array<i32>} : memref<55x10xf32, #tpu.memory_space<vmem>>, vector<7x10xf32>,
    %c56 = arith.constant 56 : index
    %c0_26 = arith.constant 0 : index
    %36 = tpu.strided_load %arg14[%c56, %c0_26] {strides = array<i32: 2, 1>} : memref<196x10xf32, #tpu.memory_space<vmem>>, vector<7x10xf32>
    %c57 = arith.constant 57 : index
    %c0_27 = arith.constant 0 : index
    %37 = tpu.strided_load %arg14[%c57, %c0_27] {strides = array<i32: 2, 1>} : memref<196x10xf32, #tpu.memory_space<vmem>>, vector<7x10xf32>
    %38 = arith.maximumf %36, %37 : vector<7x10xf32>
    %c70 = arith.constant 70 : index
    %c0_28 = arith.constant 0 : index
    %39 = tpu.strided_load %arg14[%c70, %c0_28] {strides = array<i32: 2, 1>} : memref<196x10xf32, #tpu.memory_space<vmem>>, vector<7x10xf32>
    %40 = arith.maximumf %38, %39 : vector<7x10xf32>
    %c71 = arith.constant 71 : index
    %c0_29 = arith.constant 0 : index
    %41 = tpu.strided_load %arg14[%c71, %c0_29] {strides = array<i32: 2, 1>} : memref<196x10xf32, #tpu.memory_space<vmem>>, vector<7x10xf32>
    %42 = arith.maximumf %40, %41 : vector<7x10xf32>
    %c16 = arith.constant 16 : index
    %c0_30 = arith.constant 0 : index
    %43 = vector.load %arg15[%c16, %c0_30] : memref<55x10xf32, #tpu.memory_space<vmem>>, vector<7x10xf32>
    tpu.vector_store %arg15[%c16, %c0_30], %42 {strides = array<i32>} : memref<55x10xf32, #tpu.memory_space<vmem>>, vector<7x10xf32>,
    %c84 = arith.constant 84 : index
    %c0_31 = arith.constant 0 : index
    %44 = tpu.strided_load %arg14[%c84, %c0_31] {strides = array<i32: 2, 1>} : memref<196x10xf32, #tpu.memory_space<vmem>>, vector<7x10xf32>
    %c85 = arith.constant 85 : index
    %c0_32 = arith.constant 0 : index
    %45 = tpu.strided_load %arg14[%c85, %c0_32] {strides = array<i32: 2, 1>} : memref<196x10xf32, #tpu.memory_space<vmem>>, vector<7x10xf32>
    %46 = arith.maximumf %44, %45 : vector<7x10xf32>
    %c98 = arith.constant 98 : index
    %c0_33 = arith.constant 0 : index
    %47 = tpu.strided_load %arg14[%c98, %c0_33] {strides = array<i32: 2, 1>} : memref<196x10xf32, #tpu.memory_space<vmem>>, vector<7x10xf32>
    %48 = arith.maximumf %46, %47 : vector<7x10xf32>
    %c99 = arith.constant 99 : index
    %c0_34 = arith.constant 0 : index
    %49 = tpu.strided_load %arg14[%c99, %c0_34] {strides = array<i32: 2, 1>} : memref<196x10xf32, #tpu.memory_space<vmem>>, vector<7x10xf32>
    %50 = arith.maximumf %48, %49 : vector<7x10xf32>
    %c24 = arith.constant 24 : index
    %c0_35 = arith.constant 0 : index
    %51 = vector.load %arg15[%c24, %c0_35] : memref<55x10xf32, #tpu.memory_space<vmem>>, vector<7x10xf32>
    tpu.vector_store %arg15[%c24, %c0_35], %50 {strides = array<i32>} : memref<55x10xf32, #tpu.memory_space<vmem>>, vector<7x10xf32>,
    %c112 = arith.constant 112 : index
    %c0_36 = arith.constant 0 : index
    %52 = tpu.strided_load %arg14[%c112, %c0_36] {strides = array<i32: 2, 1>} : memref<196x10xf32, #tpu.memory_space<vmem>>, vector<7x10xf32>
    %c113 = arith.constant 113 : index
    %c0_37 = arith.constant 0 : index
    %53 = tpu.strided_load %arg14[%c113, %c0_37] {strides = array<i32: 2, 1>} : memref<196x10xf32, #tpu.memory_space<vmem>>, vector<7x10xf32>
    %54 = arith.maximumf %52, %53 : vector<7x10xf32>
    %c126 = arith.constant 126 : index
    %c0_38 = arith.constant 0 : index
    %55 = tpu.strided_load %arg14[%c126, %c0_38] {strides = array<i32: 2, 1>} : memref<196x10xf32, #tpu.memory_space<vmem>>, vector<7x10xf32>
    %56 = arith.maximumf %54, %55 : vector<7x10xf32>
    %c127 = arith.constant 127 : index
    %c0_39 = arith.constant 0 : index
    %57 = tpu.strided_load %arg14[%c127, %c0_39] {strides = array<i32: 2, 1>} : memref<196x10xf32, #tpu.memory_space<vmem>>, vector<7x10xf32>
    %58 = arith.maximumf %56, %57 : vector<7x10xf32>
    %c32 = arith.constant 32 : index
    %c0_40 = arith.constant 0 : index
    %59 = vector.load %arg15[%c32, %c0_40] : memref<55x10xf32, #tpu.memory_space<vmem>>, vector<7x10xf32>
    tpu.vector_store %arg15[%c32, %c0_40], %58 {strides = array<i32>} : memref<55x10xf32, #tpu.memory_space<vmem>>, vector<7x10xf32>,
    %c140 = arith.constant 140 : index
    %c0_41 = arith.constant 0 : index
    %60 = tpu.strided_load %arg14[%c140, %c0_41] {strides = array<i32: 2, 1>} : memref<196x10xf32, #tpu.memory_space<vmem>>, vector<7x10xf32>
    %c141 = arith.constant 141 : index
    %c0_42 = arith.constant 0 : index
    %61 = tpu.strided_load %arg14[%c141, %c0_42] {strides = array<i32: 2, 1>} : memref<196x10xf32, #tpu.memory_space<vmem>>, vector<7x10xf32>
    %62 = arith.maximumf %60, %61 : vector<7x10xf32>
    %c154 = arith.constant 154 : index
    %c0_43 = arith.constant 0 : index
    %63 = tpu.strided_load %arg14[%c154, %c0_43] {strides = array<i32: 2, 1>} : memref<196x10xf32, #tpu.memory_space<vmem>>, vector<7x10xf32>
    %64 = arith.maximumf %62, %63 : vector<7x10xf32>
    %c155 = arith.constant 155 : index
    %c0_44 = arith.constant 0 : index
    %65 = tpu.strided_load %arg14[%c155, %c0_44] {strides = array<i32: 2, 1>} : memref<196x10xf32, #tpu.memory_space<vmem>>, vector<7x10xf32>
    %66 = arith.maximumf %64, %65 : vector<7x10xf32>
    %c40 = arith.constant 40 : index
    %c0_45 = arith.constant 0 : index
    %67 = vector.load %arg15[%c40, %c0_45] : memref<55x10xf32, #tpu.memory_space<vmem>>, vector<7x10xf32>
    tpu.vector_store %arg15[%c40, %c0_45], %66 {strides = array<i32>} : memref<55x10xf32, #tpu.memory_space<vmem>>, vector<7x10xf32>,
    %c168 = arith.constant 168 : index
    %c0_46 = arith.constant 0 : index
    %68 = tpu.strided_load %arg14[%c168, %c0_46] {strides = array<i32: 2, 1>} : memref<196x10xf32, #tpu.memory_space<vmem>>, vector<7x10xf32>
    %c169 = arith.constant 169 : index
    %c0_47 = arith.constant 0 : index
    %69 = tpu.strided_load %arg14[%c169, %c0_47] {strides = array<i32: 2, 1>} : memref<196x10xf32, #tpu.memory_space<vmem>>, vector<7x10xf32>
    %70 = arith.maximumf %68, %69 : vector<7x10xf32>
    %c182 = arith.constant 182 : index
    %c0_48 = arith.constant 0 : index
    %71 = tpu.strided_load %arg14[%c182, %c0_48] {strides = array<i32: 2, 1>} : memref<196x10xf32, #tpu.memory_space<vmem>>, vector<7x10xf32>
    %72 = arith.maximumf %70, %71 : vector<7x10xf32>
    %c183 = arith.constant 183 : index
    %c0_49 = arith.constant 0 : index
    %73 = tpu.strided_load %arg14[%c183, %c0_49] {strides = array<i32: 2, 1>} : memref<196x10xf32, #tpu.memory_space<vmem>>, vector<7x10xf32>
    %74 = arith.maximumf %72, %73 : vector<7x10xf32>
    %c48 = arith.constant 48 : index
    %c0_50 = arith.constant 0 : index
    %75 = vector.load %arg15[%c48, %c0_50] : memref<55x10xf32, #tpu.memory_space<vmem>>, vector<7x10xf32>
    tpu.vector_store %arg15[%c48, %c0_50], %74 {strides = array<i32>} : memref<55x10xf32, #tpu.memory_space<vmem>>, vector<7x10xf32>,
    %c0_51 = arith.constant 0 : index
    %c0_52 = arith.constant 0 : index
    %76 = vector.load %arg15[%c0_51, %c0_52] : memref<55x10xf32, #tpu.memory_space<vmem>>, vector<37x10xf32>
    %c0_53 = arith.constant 0 : index
    %c0_54 = arith.constant 0 : index
    %c0_55 = arith.constant 0 : index
    %77 = vector.load %arg5[%c0_53, %c0_54, %c0_55] : memref<9x10x16xf32, #tpu.memory_space<vmem>>, vector<1x10x16xf32>
    %78 = vector.shape_cast %77 : vector<1x10x16xf32> to vector<10x16xf32>
    %cst_56 = arith.constant dense<0.000000e+00> : vector<37x16xf32>
    %79 = tpu.matmul %76, %78, %cst_56 {dimension_numbers = #tpu.dot_dimension_numbers<[1], [0], [0], [1], [0, 0, 1, 1], [], []>} : vector<37x10xf32>, vector<10x16xf32>, vector<37x16xf32> -> vector<37x16xf32>
    %c1_57 = arith.constant 1 : index
    %c0_58 = arith.constant 0 : index
    %80 = vector.load %arg15[%c1_57, %c0_58] : memref<55x10xf32, #tpu.memory_space<vmem>>, vector<37x10xf32>
    %c1_59 = arith.constant 1 : index
    %c0_60 = arith.constant 0 : index
    %c0_61 = arith.constant 0 : index
    %81 = vector.load %arg5[%c1_59, %c0_60, %c0_61] : memref<9x10x16xf32, #tpu.memory_space<vmem>>, vector<1x10x16xf32>
    %82 = vector.shape_cast %81 : vector<1x10x16xf32> to vector<10x16xf32>
    %cst_62 = arith.constant dense<0.000000e+00> : vector<37x16xf32>
    %83 = tpu.matmul %80, %82, %cst_62 {dimension_numbers = #tpu.dot_dimension_numbers<[1], [0], [0], [1], [0, 0, 1, 1], [], []>} : vector<37x10xf32>, vector<10x16xf32>, vector<37x16xf32> -> vector<37x16xf32>
    %84 = arith.addf %79, %83 : vector<37x16xf32>
    %c2 = arith.constant 2 : index
    %c0_63 = arith.constant 0 : index
    %85 = vector.load %arg15[%c2, %c0_63] : memref<55x10xf32, #tpu.memory_space<vmem>>, vector<37x10xf32>
    %c2_64 = arith.constant 2 : index
    %c0_65 = arith.constant 0 : index
    %c0_66 = arith.constant 0 : index
    %86 = vector.load %arg5[%c2_64, %c0_65, %c0_66] : memref<9x10x16xf32, #tpu.memory_space<vmem>>, vector<1x10x16xf32>
    %87 = vector.shape_cast %86 : vector<1x10x16xf32> to vector<10x16xf32>
    %cst_67 = arith.constant dense<0.000000e+00> : vector<37x16xf32>
    %88 = tpu.matmul %85, %87, %cst_67 {dimension_numbers = #tpu.dot_dimension_numbers<[1], [0], [0], [1], [0, 0, 1, 1], [], []>} : vector<37x10xf32>, vector<10x16xf32>, vector<37x16xf32> -> vector<37x16xf32>
    %89 = arith.addf %84, %88 : vector<37x16xf32>
    %c8_68 = arith.constant 8 : index
    %c0_69 = arith.constant 0 : index
    %90 = vector.load %arg15[%c8_68, %c0_69] : memref<55x10xf32, #tpu.memory_space<vmem>>, vector<37x10xf32>
    %c3 = arith.constant 3 : index
    %c0_70 = arith.constant 0 : index
    %c0_71 = arith.constant 0 : index
    %91 = vector.load %arg5[%c3, %c0_70, %c0_71] : memref<9x10x16xf32, #tpu.memory_space<vmem>>, vector<1x10x16xf32>
    %92 = vector.shape_cast %91 : vector<1x10x16xf32> to vector<10x16xf32>
    %cst_72 = arith.constant dense<0.000000e+00> : vector<37x16xf32>
    %93 = tpu.matmul %90, %92, %cst_72 {dimension_numbers = #tpu.dot_dimension_numbers<[1], [0], [0], [1], [0, 0, 1, 1], [], []>} : vector<37x10xf32>, vector<10x16xf32>, vector<37x16xf32> -> vector<37x16xf32>
    %94 = arith.addf %89, %93 : vector<37x16xf32>
    %c9 = arith.constant 9 : index
    %c0_73 = arith.constant 0 : index
    %95 = vector.load %arg15[%c9, %c0_73] : memref<55x10xf32, #tpu.memory_space<vmem>>, vector<37x10xf32>
    %c4 = arith.constant 4 : index
    %c0_74 = arith.constant 0 : index
    %c0_75 = arith.constant 0 : index
    %96 = vector.load %arg5[%c4, %c0_74, %c0_75] : memref<9x10x16xf32, #tpu.memory_space<vmem>>, vector<1x10x16xf32>
    %97 = vector.shape_cast %96 : vector<1x10x16xf32> to vector<10x16xf32>
    %cst_76 = arith.constant dense<0.000000e+00> : vector<37x16xf32>
    %98 = tpu.matmul %95, %97, %cst_76 {dimension_numbers = #tpu.dot_dimension_numbers<[1], [0], [0], [1], [0, 0, 1, 1], [], []>} : vector<37x10xf32>, vector<10x16xf32>, vector<37x16xf32> -> vector<37x16xf32>
    %99 = arith.addf %94, %98 : vector<37x16xf32>
    %c10 = arith.constant 10 : index
    %c0_77 = arith.constant 0 : index
    %100 = vector.load %arg15[%c10, %c0_77] : memref<55x10xf32, #tpu.memory_space<vmem>>, vector<37x10xf32>
    %c5 = arith.constant 5 : index
    %c0_78 = arith.constant 0 : index
    %c0_79 = arith.constant 0 : index
    %101 = vector.load %arg5[%c5, %c0_78, %c0_79] : memref<9x10x16xf32, #tpu.memory_space<vmem>>, vector<1x10x16xf32>
    %102 = vector.shape_cast %101 : vector<1x10x16xf32> to vector<10x16xf32>
    %cst_80 = arith.constant dense<0.000000e+00> : vector<37x16xf32>
    %103 = tpu.matmul %100, %102, %cst_80 {dimension_numbers = #tpu.dot_dimension_numbers<[1], [0], [0], [1], [0, 0, 1, 1], [], []>} : vector<37x10xf32>, vector<10x16xf32>, vector<37x16xf32> -> vector<37x16xf32>
    %104 = arith.addf %99, %103 : vector<37x16xf32>
    %c16_81 = arith.constant 16 : index
    %c0_82 = arith.constant 0 : index
    %105 = vector.load %arg15[%c16_81, %c0_82] : memref<55x10xf32, #tpu.memory_space<vmem>>, vector<37x10xf32>
    %c6 = arith.constant 6 : index
    %c0_83 = arith.constant 0 : index
    %c0_84 = arith.constant 0 : index
    %106 = vector.load %arg5[%c6, %c0_83, %c0_84] : memref<9x10x16xf32, #tpu.memory_space<vmem>>, vector<1x10x16xf32>
    %107 = vector.shape_cast %106 : vector<1x10x16xf32> to vector<10x16xf32>
    %cst_85 = arith.constant dense<0.000000e+00> : vector<37x16xf32>
    %108 = tpu.matmul %105, %107, %cst_85 {dimension_numbers = #tpu.dot_dimension_numbers<[1], [0], [0], [1], [0, 0, 1, 1], [], []>} : vector<37x10xf32>, vector<10x16xf32>, vector<37x16xf32> -> vector<37x16xf32>
    %109 = arith.addf %104, %108 : vector<37x16xf32>
    %c17 = arith.constant 17 : index
    %c0_86 = arith.constant 0 : index
    %110 = vector.load %arg15[%c17, %c0_86] : memref<55x10xf32, #tpu.memory_space<vmem>>, vector<37x10xf32>
    %c7 = arith.constant 7 : index
    %c0_87 = arith.constant 0 : index
    %c0_88 = arith.constant 0 : index
    %111 = vector.load %arg5[%c7, %c0_87, %c0_88] : memref<9x10x16xf32, #tpu.memory_space<vmem>>, vector<1x10x16xf32>
    %112 = vector.shape_cast %111 : vector<1x10x16xf32> to vector<10x16xf32>
    %cst_89 = arith.constant dense<0.000000e+00> : vector<37x16xf32>
    %113 = tpu.matmul %110, %112, %cst_89 {dimension_numbers = #tpu.dot_dimension_numbers<[1], [0], [0], [1], [0, 0, 1, 1], [], []>} : vector<37x10xf32>, vector<10x16xf32>, vector<37x16xf32> -> vector<37x16xf32>
    %114 = arith.addf %109, %113 : vector<37x16xf32>
    %c18 = arith.constant 18 : index
    %c0_90 = arith.constant 0 : index
    %115 = vector.load %arg15[%c18, %c0_90] : memref<55x10xf32, #tpu.memory_space<vmem>>, vector<37x10xf32>
    %c8_91 = arith.constant 8 : index
    %c0_92 = arith.constant 0 : index
    %c0_93 = arith.constant 0 : index
    %116 = vector.load %arg5[%c8_91, %c0_92, %c0_93] : memref<9x10x16xf32, #tpu.memory_space<vmem>>, vector<1x10x16xf32>
    %117 = vector.shape_cast %116 : vector<1x10x16xf32> to vector<10x16xf32>
    %cst_94 = arith.constant dense<0.000000e+00> : vector<37x16xf32>
    %118 = tpu.matmul %115, %117, %cst_94 {dimension_numbers = #tpu.dot_dimension_numbers<[1], [0], [0], [1], [0, 0, 1, 1], [], []>} : vector<37x10xf32>, vector<10x16xf32>, vector<37x16xf32> -> vector<37x16xf32>
    %119 = arith.addf %114, %118 : vector<37x16xf32>
    %c0_95 = arith.constant 0 : index
    %c0_96 = arith.constant 0 : index
    %120 = vector.load %arg6[%c0_95, %c0_96] : memref<1x16xf32, #tpu.memory_space<vmem>>, vector<1x16xf32>
    %121 = vector.shape_cast %120 : vector<1x16xf32> to vector<16xf32>
    %122 = vector.shape_cast %121 : vector<16xf32> to vector<1x16xf32>
    %123 = vector.broadcast %122 : vector<1x16xf32> to vector<37x16xf32>
    %124 = arith.addf %119, %123 : vector<37x16xf32>
    %cst_97 = arith.constant 0.000000e+00 : f32
    %125 = vector.broadcast %cst_97 : f32 to vector<37x16xf32>
    %126 = arith.cmpf ogt, %124, %125 : vector<37x16xf32>
    %c0_98 = arith.constant 0 : index
    %c0_99 = arith.constant 0 : index
    %127 = vector.load %arg7[%c0_98, %c0_99] : memref<1x16xf32, #tpu.memory_space<vmem>>, vector<1x16xf32>
    %128 = vector.shape_cast %127 : vector<1x16xf32> to vector<16xf32>
    %129 = vector.shape_cast %128 : vector<16xf32> to vector<1x16xf32>
    %130 = vector.broadcast %129 : vector<1x16xf32> to vector<37x16xf32>
    %131 = arith.mulf %124, %130 : vector<37x16xf32>
    %132 = arith.select %126, %124, %131 : vector<37x16xi1>, vector<37x16xf32>
    %c0_100 = arith.constant 0 : index
    %c0_101 = arith.constant 0 : index
    %133 = vector.load %arg16[%c0_100, %c0_101] : memref<37x16xf32, #tpu.memory_space<vmem>>, vector<37x16xf32>
    tpu.vector_store %arg16[%c0_100, %c0_101], %132 {strides = array<i32>} : memref<37x16xf32, #tpu.memory_space<vmem>>, vector<37x16xf32>,
    %c0_102 = arith.constant 0 : index
    %c0_103 = arith.constant 0 : index
    %134 = vector.load %arg16[%c0_102, %c0_103] : memref<37x16xf32, #tpu.memory_space<vmem>>, vector<19x16xf32>
    %c0_104 = arith.constant 0 : index
    %c0_105 = arith.constant 0 : index
    %c0_106 = arith.constant 0 : index
    %135 = vector.load %arg8[%c0_104, %c0_105, %c0_106] : memref<9x16x32xf32, #tpu.memory_space<vmem>>, vector<1x16x32xf32>
    %136 = vector.shape_cast %135 : vector<1x16x32xf32> to vector<16x32xf32>
    %cst_107 = arith.constant dense<0.000000e+00> : vector<19x32xf32>
    %137 = tpu.matmul %134, %136, %cst_107 {dimension_numbers = #tpu.dot_dimension_numbers<[1], [0], [0], [1], [0, 0, 1, 1], [], []>} : vector<19x16xf32>, vector<16x32xf32>, vector<19x32xf32> -> vector<19x32xf32>
    %c1_108 = arith.constant 1 : index
    %c0_109 = arith.constant 0 : index
    %138 = vector.load %arg16[%c1_108, %c0_109] : memref<37x16xf32, #tpu.memory_space<vmem>>, vector<19x16xf32>
    %c1_110 = arith.constant 1 : index
    %c0_111 = arith.constant 0 : index
    %c0_112 = arith.constant 0 : index
    %139 = vector.load %arg8[%c1_110, %c0_111, %c0_112] : memref<9x16x32xf32, #tpu.memory_space<vmem>>, vector<1x16x32xf32>
    %140 = vector.shape_cast %139 : vector<1x16x32xf32> to vector<16x32xf32>
    %cst_113 = arith.constant dense<0.000000e+00> : vector<19x32xf32>
    %141 = tpu.matmul %138, %140, %cst_113 {dimension_numbers = #tpu.dot_dimension_numbers<[1], [0], [0], [1], [0, 0, 1, 1], [], []>} : vector<19x16xf32>, vector<16x32xf32>, vector<19x32xf32> -> vector<19x32xf32>
    %142 = arith.addf %137, %141 : vector<19x32xf32>
    %c2_114 = arith.constant 2 : index
    %c0_115 = arith.constant 0 : index
    %143 = vector.load %arg16[%c2_114, %c0_115] : memref<37x16xf32, #tpu.memory_space<vmem>>, vector<19x16xf32>
    %c2_116 = arith.constant 2 : index
    %c0_117 = arith.constant 0 : index
    %c0_118 = arith.constant 0 : index
    %144 = vector.load %arg8[%c2_116, %c0_117, %c0_118] : memref<9x16x32xf32, #tpu.memory_space<vmem>>, vector<1x16x32xf32>
    %145 = vector.shape_cast %144 : vector<1x16x32xf32> to vector<16x32xf32>
    %cst_119 = arith.constant dense<0.000000e+00> : vector<19x32xf32>
    %146 = tpu.matmul %143, %145, %cst_119 {dimension_numbers = #tpu.dot_dimension_numbers<[1], [0], [0], [1], [0, 0, 1, 1], [], []>} : vector<19x16xf32>, vector<16x32xf32>, vector<19x32xf32> -> vector<19x32xf32>
    %147 = arith.addf %142, %146 : vector<19x32xf32>
    %c8_120 = arith.constant 8 : index
    %c0_121 = arith.constant 0 : index
    %148 = vector.load %arg16[%c8_120, %c0_121] : memref<37x16xf32, #tpu.memory_space<vmem>>, vector<19x16xf32>
    %c3_122 = arith.constant 3 : index
    %c0_123 = arith.constant 0 : index
    %c0_124 = arith.constant 0 : index
    %149 = vector.load %arg8[%c3_122, %c0_123, %c0_124] : memref<9x16x32xf32, #tpu.memory_space<vmem>>, vector<1x16x32xf32>
    %150 = vector.shape_cast %149 : vector<1x16x32xf32> to vector<16x32xf32>
    %cst_125 = arith.constant dense<0.000000e+00> : vector<19x32xf32>
    %151 = tpu.matmul %148, %150, %cst_125 {dimension_numbers = #tpu.dot_dimension_numbers<[1], [0], [0], [1], [0, 0, 1, 1], [], []>} : vector<19x16xf32>, vector<16x32xf32>, vector<19x32xf32> -> vector<19x32xf32>
    %152 = arith.addf %147, %151 : vector<19x32xf32>
    %c9_126 = arith.constant 9 : index
    %c0_127 = arith.constant 0 : index
    %153 = vector.load %arg16[%c9_126, %c0_127] : memref<37x16xf32, #tpu.memory_space<vmem>>, vector<19x16xf32>
    %c4_128 = arith.constant 4 : index
    %c0_129 = arith.constant 0 : index
    %c0_130 = arith.constant 0 : index
    %154 = vector.load %arg8[%c4_128, %c0_129, %c0_130] : memref<9x16x32xf32, #tpu.memory_space<vmem>>, vector<1x16x32xf32>
    %155 = vector.shape_cast %154 : vector<1x16x32xf32> to vector<16x32xf32>
    %cst_131 = arith.constant dense<0.000000e+00> : vector<19x32xf32>
    %156 = tpu.matmul %153, %155, %cst_131 {dimension_numbers = #tpu.dot_dimension_numbers<[1], [0], [0], [1], [0, 0, 1, 1], [], []>} : vector<19x16xf32>, vector<16x32xf32>, vector<19x32xf32> -> vector<19x32xf32>
    %157 = arith.addf %152, %156 : vector<19x32xf32>
    %c10_132 = arith.constant 10 : index
    %c0_133 = arith.constant 0 : index
    %158 = vector.load %arg16[%c10_132, %c0_133] : memref<37x16xf32, #tpu.memory_space<vmem>>, vector<19x16xf32>
    %c5_134 = arith.constant 5 : index
    %c0_135 = arith.constant 0 : index
    %c0_136 = arith.constant 0 : index
    %159 = vector.load %arg8[%c5_134, %c0_135, %c0_136] : memref<9x16x32xf32, #tpu.memory_space<vmem>>, vector<1x16x32xf32>
    %160 = vector.shape_cast %159 : vector<1x16x32xf32> to vector<16x32xf32>
    %cst_137 = arith.constant dense<0.000000e+00> : vector<19x32xf32>
    %161 = tpu.matmul %158, %160, %cst_137 {dimension_numbers = #tpu.dot_dimension_numbers<[1], [0], [0], [1], [0, 0, 1, 1], [], []>} : vector<19x16xf32>, vector<16x32xf32>, vector<19x32xf32> -> vector<19x32xf32>
    %162 = arith.addf %157, %161 : vector<19x32xf32>
    %c16_138 = arith.constant 16 : index
    %c0_139 = arith.constant 0 : index
    %163 = vector.load %arg16[%c16_138, %c0_139] : memref<37x16xf32, #tpu.memory_space<vmem>>, vector<19x16xf32>
    %c6_140 = arith.constant 6 : index
    %c0_141 = arith.constant 0 : index
    %c0_142 = arith.constant 0 : index
    %164 = vector.load %arg8[%c6_140, %c0_141, %c0_142] : memref<9x16x32xf32, #tpu.memory_space<vmem>>, vector<1x16x32xf32>
    %165 = vector.shape_cast %164 : vector<1x16x32xf32> to vector<16x32xf32>
    %cst_143 = arith.constant dense<0.000000e+00> : vector<19x32xf32>
    %166 = tpu.matmul %163, %165, %cst_143 {dimension_numbers = #tpu.dot_dimension_numbers<[1], [0], [0], [1], [0, 0, 1, 1], [], []>} : vector<19x16xf32>, vector<16x32xf32>, vector<19x32xf32> -> vector<19x32xf32>
    %167 = arith.addf %162, %166 : vector<19x32xf32>
    %c17_144 = arith.constant 17 : index
    %c0_145 = arith.constant 0 : index
    %168 = vector.load %arg16[%c17_144, %c0_145] : memref<37x16xf32, #tpu.memory_space<vmem>>, vector<19x16xf32>
    %c7_146 = arith.constant 7 : index
    %c0_147 = arith.constant 0 : index
    %c0_148 = arith.constant 0 : index
    %169 = vector.load %arg8[%c7_146, %c0_147, %c0_148] : memref<9x16x32xf32, #tpu.memory_space<vmem>>, vector<1x16x32xf32>
    %170 = vector.shape_cast %169 : vector<1x16x32xf32> to vector<16x32xf32>
    %cst_149 = arith.constant dense<0.000000e+00> : vector<19x32xf32>
    %171 = tpu.matmul %168, %170, %cst_149 {dimension_numbers = #tpu.dot_dimension_numbers<[1], [0], [0], [1], [0, 0, 1, 1], [], []>} : vector<19x16xf32>, vector<16x32xf32>, vector<19x32xf32> -> vector<19x32xf32>
    %172 = arith.addf %167, %171 : vector<19x32xf32>
    %c18_150 = arith.constant 18 : index
    %c0_151 = arith.constant 0 : index
    %173 = vector.load %arg16[%c18_150, %c0_151] : memref<37x16xf32, #tpu.memory_space<vmem>>, vector<19x16xf32>
    %c8_152 = arith.constant 8 : index
    %c0_153 = arith.constant 0 : index
    %c0_154 = arith.constant 0 : index
    %174 = vector.load %arg8[%c8_152, %c0_153, %c0_154] : memref<9x16x32xf32, #tpu.memory_space<vmem>>, vector<1x16x32xf32>
    %175 = vector.shape_cast %174 : vector<1x16x32xf32> to vector<16x32xf32>
    %cst_155 = arith.constant dense<0.000000e+00> : vector<19x32xf32>
    %176 = tpu.matmul %173, %175, %cst_155 {dimension_numbers = #tpu.dot_dimension_numbers<[1], [0], [0], [1], [0, 0, 1, 1], [], []>} : vector<19x16xf32>, vector<16x32xf32>, vector<19x32xf32> -> vector<19x32xf32>
    %177 = arith.addf %172, %176 : vector<19x32xf32>
    %c0_156 = arith.constant 0 : index
    %c0_157 = arith.constant 0 : index
    %178 = vector.load %arg9[%c0_156, %c0_157] : memref<1x32xf32, #tpu.memory_space<vmem>>, vector<1x32xf32>
    %179 = vector.shape_cast %178 : vector<1x32xf32> to vector<32xf32>
    %180 = vector.shape_cast %179 : vector<32xf32> to vector<1x32xf32>
    %181 = vector.broadcast %180 : vector<1x32xf32> to vector<19x32xf32>
    %182 = arith.addf %177, %181 : vector<19x32xf32>
    %cst_158 = arith.constant 0.000000e+00 : f32
    %183 = vector.broadcast %cst_158 : f32 to vector<19x32xf32>
    %184 = arith.cmpf ogt, %182, %183 : vector<19x32xf32>
    %c0_159 = arith.constant 0 : index
    %c0_160 = arith.constant 0 : index
    %185 = vector.load %arg10[%c0_159, %c0_160] : memref<1x32xf32, #tpu.memory_space<vmem>>, vector<1x32xf32>
    %186 = vector.shape_cast %185 : vector<1x32xf32> to vector<32xf32>
    %187 = vector.shape_cast %186 : vector<32xf32> to vector<1x32xf32>
    %188 = vector.broadcast %187 : vector<1x32xf32> to vector<19x32xf32>
    %189 = arith.mulf %182, %188 : vector<19x32xf32>
    %190 = arith.select %184, %182, %189 : vector<19x32xi1>, vector<19x32xf32>
    %c0_161 = arith.constant 0 : index
    %c0_162 = arith.constant 0 : index
    %191 = vector.load %arg11[%c0_161, %c0_162] : memref<32x6xf32, #tpu.memory_space<vmem>>, vector<32x6xf32>
    %cst_163 = arith.constant dense<0.000000e+00> : vector<19x6xf32>
    %192 = tpu.matmul %190, %191, %cst_163 {dimension_numbers = #tpu.dot_dimension_numbers<[1], [0], [0], [1], [0, 0, 1, 1], [], []>} : vector<19x32xf32>, vector<32x6xf32>, vector<19x6xf32> -> vector<19x6xf32>
    %c0_164 = arith.constant 0 : index
    %c0_165 = arith.constant 0 : index
    %193 = vector.load %arg12[%c0_164, %c0_165] : memref<1x6xf32, #tpu.memory_space<vmem>>, vector<1x6xf32>
    %194 = vector.shape_cast %193 : vector<1x6xf32> to vector<6xf32>
    %195 = vector.shape_cast %194 : vector<6xf32> to vector<1x6xf32>
    %196 = vector.broadcast %195 : vector<1x6xf32> to vector<19x6xf32>
    %197 = arith.addf %192, %196 : vector<19x6xf32>
    %198 = tpu.iota {dimensions = array<i32: 1>} : vector<19x6xi32>
    %c2_i32 = arith.constant 2 : i32
    %199 = vector.broadcast %c2_i32 : i32 to vector<19x6xi32>
    %200 = arith.cmpi slt, %198, %199 : vector<19x6xi32>
    %cst_166 = arith.constant 0xFF800000 : f32
    %201 = vector.broadcast %cst_166 : f32 to vector<19x6xf32>
    %202 = arith.select %200, %197, %201 : vector<19x6xi1>, vector<19x6xf32>
    %cst_167 = arith.constant dense<0xFF800000> : vector<19xf32>
    %203 = vector.multi_reduction <maximumf>, %202, %cst_167 [1] : vector<19x6xf32> to vector<19xf32>
    %204 = vector.shape_cast %203 : vector<19xf32> to vector<19x1xf32>
    %205 = vector.broadcast %204 : vector<19x1xf32> to vector<19x6xf32>
    %206 = arith.subf %197, %205 : vector<19x6xf32>
    %cst_168 = arith.constant 0.000000e+00 : f32
    %207 = vector.broadcast %cst_168 : f32 to vector<19x6xf32>
    %208 = arith.select %200, %206, %207 : vector<19x6xi1>, vector<19x6xf32>
    %209 = math.exp %208 : vector<19x6xf32>
    %cst_169 = arith.constant 0.000000e+00 : f32
    %210 = vector.broadcast %cst_169 : f32 to vector<19x6xf32>
    %211 = arith.select %200, %209, %210 : vector<19x6xi1>, vector<19x6xf32>
    %cst_170 = arith.constant dense<0.000000e+00> : vector<19xf32>
    %212 = vector.multi_reduction <add>, %211, %cst_170 [1] : vector<19x6xf32> to vector<19xf32>
    %213 = vector.shape_cast %212 : vector<19xf32> to vector<19x1xf32>
    %214 = vector.broadcast %213 : vector<19x1xf32> to vector<19x6xf32>
    %215 = arith.divf %209, %214 : vector<19x6xf32>
    %216 = arith.select %200, %215, %197 : vector<19x6xi1>, vector<19x6xf32>
    %c0_171 = arith.constant 0 : index
    %c0_172 = arith.constant 0 : index
    %c0_173 = arith.constant 0 : index
    %217 = vector.load %arg13[%c0_171, %c0_172, %c0_173] : memref<1x19x6xf32, #tpu.memory_space<vmem>>, vector<1x19x6xf32>
    %218 = vector.shape_cast %217 : vector<1x19x6xf32> to vector<19x6xf32>
    %219 = vector.shape_cast %216 : vector<19x6xf32> to vector<1x19x6xf32>
    tpu.vector_store %arg13[%c0_171, %c0_172, %c0_173], %219 {strides = array<i32>} : memref<1x19x6xf32, #tpu.memory_space<vmem>>, vector<1x19x6xf32>,
    return
  }
  func.func @transform_0(%arg0: i32) -> (i32, i32, i32) {
    %c0_i32 = arith.constant 0 : i32
    %c0_i32_0 = arith.constant 0 : i32
    %c0_i32_1 = arith.constant 0 : i32
    return %arg0, %c0_i32, %c0_i32_0 : i32, i32, i32
  }
  func.func @transform_1(%arg0: i32) -> (i32, i32) {
    %c0_i32 = arith.constant 0 : i32
    %c0_i32_0 = arith.constant 0 : i32
    %c0_i32_1 = arith.constant 0 : i32
    return %c0_i32, %c0_i32_0 : i32, i32
  }
  func.func @transform_2(%arg0: i32) -> (i32, i32) {
    %c0_i32 = arith.constant 0 : i32
    %c0_i32_0 = arith.constant 0 : i32
    %c0_i32_1 = arith.constant 0 : i32
    return %c0_i32, %c0_i32_0 : i32, i32
  }
  func.func @transform_3(%arg0: i32) -> (i32, i32) {
    %c0_i32 = arith.constant 0 : i32
    %c0_i32_0 = arith.constant 0 : i32
    %c0_i32_1 = arith.constant 0 : i32
    return %c0_i32, %c0_i32_0 : i32, i32
  }
  func.func @transform_4(%arg0: i32) -> (i32, i32, i32) {
    %c0_i32 = arith.constant 0 : i32
    %c0_i32_0 = arith.constant 0 : i32
    %c0_i32_1 = arith.constant 0 : i32
    %c0_i32_2 = arith.constant 0 : i32
    return %c0_i32, %c0_i32_0, %c0_i32_1 : i32, i32, i32
  }
  func.func @transform_5(%arg0: i32) -> (i32, i32) {
    %c0_i32 = arith.constant 0 : i32
    %c0_i32_0 = arith.constant 0 : i32
    %c0_i32_1 = arith.constant 0 : i32
    return %c0_i32, %c0_i32_0 : i32, i32
  }
  func.func @transform_6(%arg0: i32) -> (i32, i32) {
    %c0_i32 = arith.constant 0 : i32
    %c0_i32_0 = arith.constant 0 : i32
    %c0_i32_1 = arith.constant 0 : i32
    return %c0_i32, %c0_i32_0 : i32, i32
  }
  func.func @transform_7(%arg0: i32) -> (i32, i32, i32) {
    %c0_i32 = arith.constant 0 : i32
    %c0_i32_0 = arith.constant 0 : i32
    %c0_i32_1 = arith.constant 0 : i32
    %c0_i32_2 = arith.constant 0 : i32
    return %c0_i32, %c0_i32_0, %c0_i32_1 : i32, i32, i32
  }
  func.func @transform_8(%arg0: i32) -> (i32, i32) {
    %c0_i32 = arith.constant 0 : i32
    %c0_i32_0 = arith.constant 0 : i32
    %c0_i32_1 = arith.constant 0 : i32
    return %c0_i32, %c0_i32_0 : i32, i32
  }
  func.func @transform_9(%arg0: i32) -> (i32, i32) {
    %c0_i32 = arith.constant 0 : i32
    %c0_i32_0 = arith.constant 0 : i32
    %c0_i32_1 = arith.constant 0 : i32
    return %c0_i32, %c0_i32_0 : i32, i32
  }
  func.func @transform_10(%arg0: i32) -> (i32, i32) {
    %c0_i32 = arith.constant 0 : i32
    %c0_i32_0 = arith.constant 0 : i32
    %c0_i32_1 = arith.constant 0 : i32
    return %c0_i32, %c0_i32_0 : i32, i32
  }
  func.func @transform_11(%arg0: i32) -> (i32, i32) {
    %c0_i32 = arith.constant 0 : i32
    %c0_i32_0 = arith.constant 0 : i32
    %c0_i32_1 = arith.constant 0 : i32
    return %c0_i32, %c0_i32_0 : i32, i32
  }
  func.func @transform_12(%arg0: i32) -> (i32, i32, i32) {
    %c0_i32 = arith.constant 0 : i32
    %c0_i32_0 = arith.constant 0 : i32
    %c0_i32_1 = arith.constant 0 : i32
    return %arg0, %c0_i32, %c0_i32_0 : i32, i32, i32
  }
}

</mosaic_0001>

<bundles_post_ra>
// kernel: pnet_forward.1
= control target key start
LH: loop header
LB: loop body
LE: loop exit
PB: predicated region body
PF: predicated region fallthrough
CT: control target
= control target key end

     0   :  { %s4019_s21 = smov 0   ;;  %s4769_s0 = inlined_call_operand.vmem [shape: f32[2,196,27], index: 0, kind: input, shape index: {}]   ;;  %s4770_s1 = inlined_call_operand.vmem [shape: f32[27,10], index: 1, kind: input, shape index: {}]   ;;  %s4771_s2 = inlined_call_operand.vmem [shape: f32[1,10], index: 2, kind: input, shape index: {}]   ;;  %s4772_s3 = inlined_call_operand.vmem [shape: f32[1,10], index: 3, kind: input, shape index: {}]   ;;  %s4773_s4 = inlined_call_operand.vmem [shape: f32[9,10,16], index: 4, kind: input, shape index: {}]   ;;  %s4774_s5 = inlined_call_operand.vmem [shape: f32[1,16], index: 5, kind: input, shape index: {}]   ;;  %s4775_s6 = inlined_call_operand.vmem [shape: f32[1,16], index: 6, kind: input, shape index: {}]   ;;  %s4776_s7 = inlined_call_operand.vmem [shape: f32[9,16,32], index: 7, kind: input, shape index: {}]   ;;  %s4777_s8 = inlined_call_operand.vmem [shape: f32[1,32], index: 8, kind: input, shape index: {}]   ;;  %s4778_s9 = inlined_call_operand.vmem [shape: f32[1,32], index: 9, kind: input, shape index: {}]   ;;  %s4779_s10 = inlined_call_operand.vmem [shape: f32[32,6], index: 10, kind: input, shape index: {}]   ;;  %s4780_s11 = inlined_call_operand.vmem [shape: f32[1,6], index: 11, kind: input, shape index: {}]   ;;  %s4781_s12 = inlined_call_operand.vmem [shape: f32[2,19,6], index: 12, kind: output, shape index: {}]  }
   0x1 LB: > { %s3150_s22 = sadd.s32 4294967295, %s3948_s21   ;;  %p3154_p0 = scmp.ge.s32.totalorder %s3948_s21, 1  ;;  %s3948_s21 = sphi %s4019_s21, %s22_s21  }
   0x2   : > { %p362_p1 = scmp.lt.s32.totalorder %s3948_s21, 3 }
   0x4   : > { %p363_p2 = pnand %p3154_p0, %p362_p1 }
   0x5   : > { %v439_v0 = vld [vmem:[%s4770_s1] sm:$0xff] (!%p363_p2)  ;;  %v440_v1 = vld [vmem:[%s4770_s1 + $0x8] sm:$0xff] (!%p363_p2)  ;;  %v441_v2 = vld [vmem:[%s4770_s1 + $0x10] sm:$0xff] (!%p363_p2)  ;;  %vm526_vm0 = vcmask (!%p363_p2), 1042432   ;;  %v3950_v3 = vmov (!%p363_p2), 0.0|0.0   ;;  %p404_p3 = scmp.lt.s32.totalorder (!%p363_p2), %s3150_s22, 1 }
   0x6   : > { %366 = sbr.rel (%p363_p2) target bundleno = 1472 (0x5c0), region = 68  ;;  %3840 = vmatprep.subr.bf16.mxu0 (!%p363_p2), %v3950_v3  ;;  %v3841_v4 = vpack.c.bf16 (!%p363_p2), %v440_v1, %v439_v0  ;;  %v442_v5 = vld [vmem:[%s4770_s1 + $0x18] sm:$0x7] (!%p363_p2)  ;;  %3847 = vmatprep.subr.bf16.mxu1 (!%p363_p2), %v3950_v3  ;;  %vm3951_vm1 = vmmov (!%p363_p2), 0   ;;  %v3952_v6 = vmov (!%p363_p2), 0.0   ;;  %vm3953_vm2 = vmmov (!%p363_p2), 1  }
   0x7   : > { %3460 = vmatprep.mubr.msk.f32.mxu0 (!%p363_p2), %vm3951_vm1, %v3952_v6  ;;  %3539 = vmatprep.mubr.msk.f32.mxu1 (!%p363_p2), %vm3951_vm1, %v3952_v6  ;;  %v3844_v7 = vpack.c.bf16 (!%p363_p2), %v442_v5, %v441_v2  ;;  %vm3845_vm3 = vmpackc.low (!%p363_p2), %vm526_vm0, %vm3953_vm2  ;;  %vm450_vm4 = vcmask (!%p363_p2), 220160   ;;  %vm802_vm5 = vcmask (!%p363_p2), 80896   ;;  %vm835_vm6 = vcmask (!%p363_p2), 79872   ;;  %v3185_v34 = vld [vmem:[%s4773_s4 + $0x10] sm:$0xff] (!%p363_p2)  ;;  %v3186_v35 = vld [vmem:[%s4773_s4 + $0x18] sm:$0x3] (!%p363_p2) }
   0x8   : > { %3842 = vmatpush3.bf16.msra.mxu0 (!%p363_p2), %v3841_v4  ;;  %829 = vst.msk [vmem:[#allocation3] sm:$0xff] (!%p363_p2), %vm802_vm5, %v3952_v6  ;;  %830 = vst.msk [vmem:[#allocation3 + $0x8] sm:$0xff] (!%p363_p2), %vm802_vm5, %v3952_v6  ;;  %vm950_vm7 = vcmask (!%p363_p2), 1041408   ;;  %v3848_v36 = vpack.c.bf16 (!%p363_p2), %v3186_v35, %v3185_v34  ;;  %v3231_v37 = vld [vmem:[%s4773_s4 + $0x60] sm:$0xff] (!%p363_p2)  ;;  %v3232_v38 = vld [vmem:[%s4773_s4 + $0x68] sm:$0x3] (!%p363_p2) }
   0x9   : > { %3843 = vmatprep.subr.bf16.mxu0 (!%p363_p2), %v3950_v3  ;;  %831 = vst.msk [vmem:[#allocation3 + $0x10] sm:$0xff] (!%p363_p2), %vm802_vm5, %v3952_v6  ;;  %832 = vst.msk [vmem:[#allocation3 + $0x18] sm:$0xff] (!%p363_p2), %vm802_vm5, %v3952_v6  ;;  %v3872_v39 = vpack.c.bf16 (!%p363_p2), %v3232_v38, %v3231_v37  ;;  %v4197_v40 = vld [vmem:[%s4771_s2] ss:$0 sm:$0xff] (!%p363_p2) }
   0xa   : > { %833 = vst.msk [vmem:[#allocation3 + $0x20] sm:$0xff] (!%p363_p2), %vm802_vm5, %v3952_v6  ;;  %834 = vst.msk [vmem:[#allocation3 + $0x28] sm:$0xff] (!%p363_p2), %vm802_vm5, %v3952_v6  ;;  %v4202_v42 = vld [vmem:[%s4772_s3] ss:$0 sm:$0xff] (!%p363_p2) }
   0xb   : > { %836 = vst.msk [vmem:[#allocation3 + $0x30] sm:$0x7f] (!%p363_p2), %vm835_vm6, %v3952_v6  ;;  %vm4172_vm8 = vmpackc.low (!%p363_p2), %vm950_vm7, %vm3953_vm2 }
   0xc   : > { %3846 = vmatpush3.bf16.msk.msra.mxu0 (!%p363_p2), %vm3845_vm3, %v3844_v7  ;;  %3850 = vmatpush3.bf16.msk.msra.mxu1 (!%p363_p2), %vm4172_vm8, %v3848_v36 }
   0xd   : > { %s4785_s22 = smov (!%p404_p3, %s3150_s22), 1  ;;  %3871 = vmatprep.subr.bf16.mxu0 %v3950_v3  ;;  %3851 = vmatprep.subr.bf16.mxu1 %v3950_v3 }
   0xe   : > { %s3916_s13 = smul.u32 200, %s4785_s22 }
   0xf   : > { %s3917_s15 = smul.u32 24, %s4785_s22 }
  0x10   : > { %s4054_s16 = scalar_lea.vmem %s4769_s0, %s3916_s13 }
  0x11   : > { %v414_v8 = vld [vmem:[%s4054_s16] sm:$0xff]  ;;  %v415_v9 = vld [vmem:[%s4054_s16 + $0x8] sm:$0xff]  ;;  %v416_v10 = vld [vmem:[%s4054_s16 + $0x10] sm:$0xff]  ;;  %s413_s18 = scalar_lea.vmem %s4781_s12, %s3917_s15 }
  0x12   : > { %3461 = vmatmul.mubr.msk.f32.vlgmr.msra.gmra.mrb[0].mxu0 %vm450_vm4, %v414_v8  ;;  %v417_v11 = vld [vmem:[%s4054_s16 + $0x18] sm:$0xff]  ;;  %v418_v12 = vld [vmem:[%s4054_s16 + $0x20] sm:$0xff]  ;;  %v419_v13 = vld [vmem:[%s4054_s16 + $0x28] sm:$0xff] }
  0x13   : > { %3463 = vmatprep.mubr.msk.f32.mxu0 %vm3951_vm1, %v3952_v6  ;;  %v420_v14 = vld [vmem:[%s4054_s16 + $0x30] sm:$0xff]  ;;  %v421_v15 = vld [vmem:[%s4054_s16 + $0x38] sm:$0xff]  ;;  %v422_v16 = vld [vmem:[%s4054_s16 + $0x40] sm:$0xff]  ;;  %3874 = vmatpush3.bf16.msk.msra.mxu0 %vm4172_vm8, %v3872_v39 }
  0x14   : > { %v423_v17 = vld [vmem:[%s4054_s16 + $0x48] sm:$0xff]  ;;  %v424_v18 = vld [vmem:[%s4054_s16 + $0x50] sm:$0xff]  ;;  %v425_v19 = vld [vmem:[%s4054_s16 + $0x58] sm:$0xff]  ;;  %3879 = vmatprep.subr.bf16.mxu0 %v3950_v3 }
  0x15   : > { %v426_v20 = vld [vmem:[%s4054_s16 + $0x60] sm:$0xff]  ;;  %v427_v21 = vld [vmem:[%s4054_s16 + $0x68] sm:$0xff]  ;;  %v428_v22 = vld [vmem:[%s4054_s16 + $0x70] sm:$0xff] }
  0x16   : > { %3464 = vmatmul.mubr.msk.f32.gmra.mrb[2].mxu0 %vm450_vm4, %v415_v9  ;;  %v429_v23 = vld [vmem:[%s4054_s16 + $0x78] sm:$0xff]  ;;  %v430_v24 = vld [vmem:[%s4054_s16 + $0x80] sm:$0xff]  ;;  %v431_v25 = vld [vmem:[%s4054_s16 + $0x88] sm:$0xff] }
  0x17   : > { %3466 = vmatprep.mubr.msk.f32.mxu0 %vm3951_vm1, %v3952_v6  ;;  %v432_v26 = vld [vmem:[%s4054_s16 + $0x90] sm:$0xff]  ;;  %v433_v27 = vld [vmem:[%s4054_s16 + $0x98] sm:$0xff]  ;;  %v434_v28 = vld [vmem:[%s4054_s16 + $0xa0] sm:$0xff] }
  0x18   : > { %v435_v29 = vld [vmem:[%s4054_s16 + $0xa8] sm:$0xff]  ;;  %v436_v30 = vld [vmem:[%s4054_s16 + $0xb0] sm:$0xff]  ;;  %v437_v31 = vld [vmem:[%s4054_s16 + $0xb8] sm:$0xff] }
  0x19   : > { %v438_v32 = vld [vmem:[%s4054_s16 + $0xc0] sm:$0xf] }
  0x1a   : > { %3467 = vmatmul.mubr.msk.f32.gmra.mrb[4].mxu0 %vm450_vm4, %v416_v10 }
  0x1b   : > { %3469 = vmatprep.mubr.msk.f32.mxu0 %vm3951_vm1, %v3952_v6 }
  0x1e   : > { %3470 = vmatmul.mubr.msk.f32.gmra.mrb[6].mxu0 %vm450_vm4, %v417_v11 }
  0x1f   : > { %3472 = vmatprep.mubr.msk.f32.mxu0 %vm3951_vm1, %v3952_v6 }
  0x22   : > { %3473 = vmatmul.mubr.msk.f32.gmra.mrb[8].mxu0 %vm450_vm4, %v418_v12 }
  0x23   : > { %3475 = vmatprep.mubr.msk.f32.mxu0 %vm3951_vm1, %v3952_v6 }
  0x26   : > { %3476 = vmatmul.mubr.msk.f32.gmra.mrb[10].mxu0 %vm450_vm4, %v419_v13 }
  0x27   : > { %3478 = vmatprep.mubr.msk.f32.mxu0 %vm3951_vm1, %v3952_v6 }
  0x2a   : > { %3479 = vmatmul.mubr.msk.f32.gmra.mrb[12].mxu0 %vm450_vm4, %v420_v14 }
  0x2b   : > { %3481 = vmatprep.mubr.msk.f32.mxu0 %vm3951_vm1, %v3952_v6 }
  0x2e   : > { %3482 = vmatmul.mubr.msk.f32.gmra.mrb[14].mxu0 %vm450_vm4, %v421_v15 }
  0x2f   : > { %3484 = vmatprep.mubr.msk.f32.mxu0 %vm3951_vm1, %v3952_v6 }
  0x32   : > { %3485 = vmatmul.mubr.msk.f32.gmra.mrb[16].mxu0 %vm450_vm4, %v422_v16 }
  0x33   : > { %3487 = vmatprep.mubr.msk.f32.mxu0 %vm3951_vm1, %v3952_v6 }
  0x36   : > { %3488 = vmatmul.mubr.msk.f32.gmra.mrb[18].mxu0 %vm450_vm4, %v423_v17 }
  0x37   : > { %3490 = vmatprep.mubr.msk.f32.mxu0 %vm3951_vm1, %v3952_v6 }
  0x3a   : > { %3491 = vmatmul.mubr.msk.f32.gmra.mrb[20].mxu0 %vm450_vm4, %v424_v18 }
  0x3b   : > { %3493 = vmatprep.mubr.msk.f32.mxu0 %vm3951_vm1, %v3952_v6 }
  0x3e   : > { %3494 = vmatmul.mubr.msk.f32.gmra.mrb[22].mxu0 %vm450_vm4, %v425_v19 }
  0x3f   : > { %3496 = vmatprep.mubr.msk.f32.mxu0 %vm3951_vm1, %v3952_v6 }
  0x42   : > { %3497 = vmatmul.mubr.msk.f32.gmra.mrb[24].mxu0 %vm450_vm4, %v426_v20 }
  0x43   : > { %3499 = vmatprep.mubr.msk.f32.mxu0 %vm3951_vm1, %v3952_v6 }
  0x46   : > { %3500 = vmatmul.mubr.msk.f32.gmra.mrb[26].mxu0 %vm450_vm4, %v427_v21 }
  0x47   : > { %3502 = vmatprep.mubr.msk.f32.mxu0 %vm3951_vm1, %v3952_v6 }
  0x4a   : > { %3503 = vmatmul.mubr.msk.f32.gmra.mrb[28].mxu0 %vm450_vm4, %v428_v22 }
  0x4b   : > { %3505 = vmatprep.mubr.msk.f32.mxu0 %vm3951_vm1, %v3952_v6 }
  0x4e   : > { %3506 = vmatmul.mubr.msk.f32.gmra.mrb[30].mxu0 %vm450_vm4, %v429_v23 }
  0x4f   : > { %3508 = vmatprep.mubr.msk.f32.mxu0 %vm3951_vm1, %v3952_v6 }
  0x52   : > { %3509 = vmatmul.mubr.msk.f32.gmra.mrb[32].mxu0 %vm450_vm4, %v430_v24 }
  0x53   : > { %3511 = vmatprep.mubr.msk.f32.mxu0 %vm3951_vm1, %v3952_v6 }
  0x56   : > { %3512 = vmatmul.mubr.msk.f32.gmra.mrb[34].mxu0 %vm450_vm4, %v431_v25 }
  0x57   : > { %3514 = vmatprep.mubr.msk.f32.mxu0 %vm3951_vm1, %v3952_v6 }
  0x5a   : > { %3515 = vmatmul.mubr.msk.f32.gmra.mrb[36].mxu0 %vm450_vm4, %v432_v26 }
  0x5b   : > { %3517 = vmatprep.mubr.msk.f32.mxu0 %vm3951_vm1, %v3952_v6 }
  0x5e   : > { %3518 = vmatmul.mubr.msk.f32.gmra.mrb[38].mxu0 %vm450_vm4, %v433_v27 }
  0x5f   : > { %3520 = vmatprep.mubr.msk.f32.mxu0 %vm3951_vm1, %v3952_v6 }
  0x62   : > { %3521 = vmatmul.mubr.msk.f32.gmra.mrb[40].mxu0 %vm450_vm4, %v434_v28 }
  0x63   : > { %3523 = vmatprep.mubr.msk.f32.mxu0 %vm3951_vm1, %v3952_v6 }
  0x66   : > { %3524 = vmatmul.mubr.msk.f32.gmra.mrb[42].mxu0 %vm450_vm4, %v435_v29 }
  0x67   : > { %3526 = vmatprep.mubr.msk.f32.mxu0 %vm3951_vm1, %v3952_v6 }
  0x6a   : > { %3527 = vmatmul.mubr.msk.f32.gmra.mrb[44].mxu0 %vm450_vm4, %v436_v30 }
  0x6b   : > { %3529 = vmatprep.mubr.msk.f32.mxu0 %vm3951_vm1, %v3952_v6 }
  0x6e   : > { %3530 = vmatmul.mubr.msk.f32.gmra.mrb[46].mxu0 %vm450_vm4, %v437_v31 }
  0x6f   : > { %3532 = vmatprep.mubr.msk.f32.mxu0 %vm3951_vm1, %v3952_v6 }
  0x72   : > { %3533 = vmatmul.mubr.msk.f32.gmra.mrb[48].mxu0 %vm450_vm4, %v438_v32 }
  0x73   : > { %3653 = vmatprep.mubr.msk.f32.mxu0 %vm3951_vm1, %v3952_v6 }
  0xe5   : > { %v596_v41 = vpop.f32.mrb[0].mxu0 }
  0xe6   : > { %v597_v43 = vadd.f32 %v4197_v40, %v596_v41  ;;  %v3462_v44 = vpop.f32.mrb[1].mxu0 }
  0xe8   : > { %vm720_vm9 = vcmp.gt.f32.partialorder %v597_v43, 0.0  ;;  %v752_v45 = vmul.f32 %v4202_v42, %v597_v43 }
  0xe9   : > { %v601_v46 = vpop.f32.mrb[2].mxu0 }
  0xea   : > { %v777_v47 = vsel %vm720_vm9, %v597_v43, %v752_v45  ;;  %v602_v48 = vadd.f32 %v4197_v40, %v601_v46  ;;  %v3465_v49 = vpop.f32.mrb[3].mxu0 }
  0xeb   : > { %803 = vst.msk [vmem:[#allocation2] sm:$0xff] %vm802_vm5, %v777_v47 }
  0xec   : > { %vm721_vm10 = vcmp.gt.f32.partialorder %v602_v48, 0.0  ;;  %v753_v50 = vmul.f32 %v4202_v42, %v602_v48 }
  0xed   : > { %v606_v51 = vpop.f32.mrb[4].mxu0 }
  0xee   : > { %v778_v52 = vsel %vm721_vm10, %v602_v48, %v753_v50  ;;  %v607_v53 = vadd.f32 %v4197_v40, %v606_v51  ;;  %v3468_v54 = vpop.f32.mrb[5].mxu0 }
  0xef   : > { %804 = vst.msk [vmem:[#allocation2 + $0x8] sm:$0xff] %vm802_vm5, %v778_v52  ;;  %v925_v52 = vld [vmem:[%s4773_s4] sm:$0xff] }
  0xf0   : > { %vm722_vm11 = vcmp.gt.f32.partialorder %v607_v53, 0.0  ;;  %v754_v55 = vmul.f32 %v4202_v42, %v607_v53 }
  0xf1   : > { %v611_v56 = vpop.f32.mrb[6].mxu0 }
  0xf2   : > { %v779_v57 = vsel %vm722_vm11, %v607_v53, %v754_v55  ;;  %v612_v58 = vadd.f32 %v4197_v40, %v611_v56  ;;  %v3471_v59 = vpop.f32.mrb[7].mxu0  ;;  %v926_v53 = vld [vmem:[%s4773_s4 + $0x8] sm:$0x3] }
  0xf3   : > { %805 = vst.msk [vmem:[#allocation2 + $0x10] sm:$0xff] %vm802_vm5, %v779_v57 }
  0xf4   : > { %vm723_vm12 = vcmp.gt.f32.partialorder %v612_v58, 0.0  ;;  %v755_v60 = vmul.f32 %v4202_v42, %v612_v58 }
  0xf5   : > { %v616_v61 = vpop.f32.mrb[8].mxu0 }
  0xf6   : > { %v780_v62 = vsel %vm723_vm12, %v612_v58, %v755_v60  ;;  %v617_v63 = vadd.f32 %v4197_v40, %v616_v61  ;;  %v3474_v0 = vpop.f32.mrb[9].mxu0  ;;  %v837_v2 = vld [vmem:[#allocation2] ss:$2 sm:$0x7f]  ;;  %v3852_v58 = vpack.c.bf16 %v926_v53, %v925_v52 }
  0xf7   : > { %806 = vst.msk [vmem:[#allocation2 + $0x18] sm:$0xff] %vm802_vm5, %v780_v62  ;;  %v839_v5 = vld [vmem:[#allocation2 + $0x1] ss:$2 sm:$0x7f] }
  0xf8   : > { %vm724_vm13 = vcmp.gt.f32.partialorder %v617_v63, 0.0  ;;  %v756_v1 = vmul.f32 %v4202_v42, %v617_v63  ;;  %v840_v11 = vmax.f32 %v837_v2, %v839_v5 }
  0xf9   : > { %v621_v4 = vpop.f32.mrb[10].mxu0 }
  0xfa   : > { %v781_v7 = vsel %vm724_vm13, %v617_v63, %v756_v1  ;;  %v622_v8 = vadd.f32 %v4197_v40, %v621_v4  ;;  %v3477_v9 = vpop.f32.mrb[11].mxu0 }
  0xfb   : > { %807 = vst.msk [vmem:[#allocation2 + $0x20] sm:$0xff] %vm802_vm5, %v781_v7 }
  0xfc   : > { %vm725_vm14 = vcmp.gt.f32.partialorder %v622_v8, 0.0  ;;  %v757_v10 = vmul.f32 %v4202_v42, %v622_v8 }
  0xfd   : > { %v626_v12 = vpop.f32.mrb[12].mxu0 }
  0xfe   : > { %v842_v13 = vld [vmem:[#allocation2 + $0xe] ss:$2 sm:$0x7f]  ;;  %v782_v14 = vsel %vm725_vm14, %v622_v8, %v757_v10  ;;  %v627_v15 = vadd.f32 %v4197_v40, %v626_v12  ;;  %v3480_v17 = vpop.f32.mrb[13].mxu0 }
  0xff   : > { %v843_v16 = vmax.f32 %v840_v11, %v842_v13  ;;  %808 = vst.msk [vmem:[#allocation2 + $0x28] sm:$0xff] %vm802_vm5, %v782_v14  ;;  %v845_v18 = vld [vmem:[#allocation2 + $0xf] ss:$2 sm:$0x7f] }
 0x100   : > { %vm726_vm15 = vcmp.gt.f32.partialorder %v627_v15, 0.0  ;;  %v758_v19 = vmul.f32 %v4202_v42, %v627_v15 }
 0x101   : > { %v846_v20 = vmax.f32 %v843_v16, %v845_v18  ;;  %v631_v21 = vpop.f32.mrb[14].mxu0 }
 0x102   : > { %v783_v22 = vsel %vm726_vm15, %v627_v15, %v758_v19  ;;  %v632_v23 = vadd.f32 %v4197_v40, %v631_v21  ;;  %v3483_v24 = vpop.f32.mrb[15].mxu0 }
 0x103   : > { %809 = vst.msk [vmem:[#allocation2 + $0x30] sm:$0xff] %vm802_vm5, %v783_v22 }
 0x104   : > { %847 = vst.msk [vmem:[#allocation3] sm:$0x7f] %vm835_vm6, %v846_v20  ;;  %vm727_vm0 = vcmp.gt.f32.partialorder %v632_v23, 0.0  ;;  %v759_v25 = vmul.f32 %v4202_v42, %v632_v23 }
 0x105   : > { %v636_v26 = vpop.f32.mrb[16].mxu0 }
 0x106   : > { %v849_v27 = vld [vmem:[#allocation2 + $0x1c] ss:$2 sm:$0x7f]  ;;  %v851_v28 = vld [vmem:[#allocation2 + $0x1d] ss:$2 sm:$0x7f]  ;;  %v784_v29 = vsel %vm727_vm0, %v632_v23, %v759_v25  ;;  %v637_v30 = vadd.f32 %v4197_v40, %v636_v26 }
 0x107   : > { %810 = vst.msk [vmem:[#allocation2 + $0x38] sm:$0xff] %vm802_vm5, %v784_v29  ;;  %v3486_v31 = vpop.f32.mrb[17].mxu0  ;;  %v852_v34 = vmax.f32 %v849_v27, %v851_v28  ;;  %v3247_v26 = vld [vmem:[%s4773_s4 + $0x80] sm:$0xff]  ;;  %v3248_v27 = vld [vmem:[%s4773_s4 + $0x88] sm:$0x3] }
 0x108   : > { %vm728_vm2 = vcmp.gt.f32.partialorder %v637_v30, 0.0  ;;  %v760_v32 = vmul.f32 %v4202_v42, %v637_v30 }
 0x109   : > { %v641_v35 = vpop.f32.mrb[18].mxu0 }
 0x10a   : > { %v854_v36 = vld [vmem:[#allocation2 + $0x2a] ss:$2 sm:$0x7f]  ;;  %v785_v37 = vsel %vm728_vm2, %v637_v30, %v760_v32  ;;  %v642_v38 = vadd.f32 %v4197_v40, %v641_v35  ;;  %v3489_v41 = vpop.f32.mrb[19].mxu0  ;;  %v3880_v35 = vpack.c.bf16 %v3248_v27, %v3247_v26 }
 0x10b   : > { %v855_v39 = vmax.f32 %v852_v34, %v854_v36  ;;  %811 = vst.msk [vmem:[#allocation2 + $0x40] sm:$0xff] %vm802_vm5, %v785_v37  ;;  %v857_v43 = vld [vmem:[#allocation2 + $0x2b] ss:$2 sm:$0x7f] }
 0x10c   : > { %vm729_vm3 = vcmp.gt.f32.partialorder %v642_v38, 0.0  ;;  %v761_v44 = vmul.f32 %v4202_v42, %v642_v38 }
 0x10d   : > { %v858_v45 = vmax.f32 %v855_v39, %v857_v43  ;;  %v646_v46 = vpop.f32.mrb[20].mxu0 }
 0x10e   : > { %v786_v47 = vsel %vm729_vm3, %v642_v38, %v761_v44  ;;  %v647_v48 = vadd.f32 %v4197_v40, %v646_v46  ;;  %v3492_v49 = vpop.f32.mrb[21].mxu0 }
 0x10f   : > { %812 = vst.msk [vmem:[#allocation2 + $0x48] sm:$0xff] %vm802_vm5, %v786_v47 }
 0x110   : > { %859 = vst.msk [vmem:[#allocation3 + $0x8] sm:$0x7f] %vm835_vm6, %v858_v45  ;;  %vm730_vm4 = vcmp.gt.f32.partialorder %v647_v48, 0.0  ;;  %v762_v50 = vmul.f32 %v4202_v42, %v647_v48 }
 0x111   : > { %v651_v51 = vpop.f32.mrb[22].mxu0 }
 0x112   : > { %v787_v54 = vsel %vm730_vm4, %v647_v48, %v762_v50  ;;  %v652_v55 = vadd.f32 %v4197_v40, %v651_v51  ;;  %v3495_v56 = vpop.f32.mrb[23].mxu0  ;;  %v861_v59 = vld [vmem:[#allocation2 + $0x38] ss:$2 sm:$0x7f] }
 0x113   : > { %813 = vst.msk [vmem:[#allocation2 + $0x50] sm:$0xff] %vm802_vm5, %v787_v54  ;;  %v863_v61 = vld [vmem:[#allocation2 + $0x39] ss:$2 sm:$0x7f] }
 0x114   : > { %vm731_vm7 = vcmp.gt.f32.partialorder %v652_v55, 0.0  ;;  %v763_v57 = vmul.f32 %v4202_v42, %v652_v55  ;;  %v864_v4 = vmax.f32 %v861_v59, %v863_v61 }
 0x115   : > { %v656_v60 = vpop.f32.mrb[24].mxu0 }
 0x116   : > { %v788_v62 = vsel %vm731_vm7, %v652_v55, %v763_v57  ;;  %v657_v63 = vadd.f32 %v4197_v40, %v656_v60  ;;  %v3498_v0 = vpop.f32.mrb[25].mxu0 }
 0x117   : > { %v927_v1 = vld [vmem:[#allocation3 + $0x1] sm:$0xff]  ;;  %814 = vst.msk [vmem:[#allocation2 + $0x58] sm:$0xff] %vm802_vm5, %v788_v62 }
 0x118   : > { %3540 = vmatmul.mubr.msk.f32.vlgmr.msra.gmra.mrb[0].mxu1 %vm802_vm5, %v927_v1  ;;  %vm732_vm9 = vcmp.gt.f32.partialorder %v657_v63, 0.0  ;;  %v764_v2 = vmul.f32 %v4202_v42, %v657_v63 }
 0x119   : > { %3542 = vmatprep.mubr.msk.f32.mxu1 %vm3951_vm1, %v3952_v6  ;;  %3854 = vmatpush3.bf16.msk.msra.mxu1 %vm4172_vm8, %v3852_v58  ;;  %v661_v5 = vpop.f32.mrb[26].mxu0 }
 0x11a   : > { %3855 = vmatprep.subr.bf16.mxu1 %v3950_v3  ;;  %v866_v7 = vld [vmem:[#allocation2 + $0x46] ss:$2 sm:$0x7f]  ;;  %v789_v8 = vsel %vm732_vm9, %v657_v63, %v764_v2  ;;  %v662_v9 = vadd.f32 %v4197_v40, %v661_v5  ;;  %v3501_v11 = vpop.f32.mrb[27].mxu0 }
 0x11b   : > { %v867_v10 = vmax.f32 %v864_v4, %v866_v7  ;;  %815 = vst.msk [vmem:[#allocation2 + $0x60] sm:$0xff] %vm802_vm5, %v789_v8  ;;  %v869_v12 = vld [vmem:[#allocation2 + $0x47] ss:$2 sm:$0x7f] }
 0x11c   : > { %vm733_vm10 = vcmp.gt.f32.partialorder %v662_v9, 0.0  ;;  %v765_v13 = vmul.f32 %v4202_v42, %v662_v9 }
 0x11d   : > { %v870_v14 = vmax.f32 %v867_v10, %v869_v12  ;;  %v666_v15 = vpop.f32.mrb[28].mxu0 }
 0x11e   : > { %v790_v16 = vsel %vm733_vm10, %v662_v9, %v765_v13  ;;  %v667_v17 = vadd.f32 %v4197_v40, %v666_v15  ;;  %v3504_v18 = vpop.f32.mrb[29].mxu0  ;;  %vm827_vm10 = vcmask 76800  }
 0x11f   : > { %871 = vst.msk [vmem:[#allocation3 + $0x10] sm:$0x7f] %vm835_vm6, %v870_v14 }
 0x120   : > { %816 = vst.msk [vmem:[#allocation2 + $0x68] sm:$0xff] %vm802_vm5, %v790_v16  ;;  %vm734_vm11 = vcmp.gt.f32.partialorder %v667_v17, 0.0  ;;  %v766_v19 = vmul.f32 %v4202_v42, %v667_v17 }
 0x121   : > { %v671_v20 = vpop.f32.mrb[30].mxu0 }
 0x122   : > { %v873_v21 = vld [vmem:[#allocation2 + $0x54] ss:$2 sm:$0x7f]  ;;  %v875_v22 = vld [vmem:[#allocation2 + $0x55] ss:$2 sm:$0x7f]  ;;  %v791_v23 = vsel %vm734_vm11, %v667_v17, %v766_v19  ;;  %v672_v24 = vadd.f32 %v4197_v40, %v671_v20 }
 0x123   : > { %817 = vst.msk [vmem:[#allocation2 + $0x70] sm:$0xff] %vm802_vm5, %v791_v23  ;;  %v3507_v25 = vpop.f32.mrb[31].mxu0  ;;  %v876_v29 = vmax.f32 %v873_v21, %v875_v22 }
 0x124   : > { %vm735_vm12 = vcmp.gt.f32.partialorder %v672_v24, 0.0  ;;  %v767_v28 = vmul.f32 %v4202_v42, %v672_v24 }
 0x125   : > { %v676_v30 = vpop.f32.mrb[32].mxu0 }
 0x126   : > { %v792_v32 = vsel %vm735_vm12, %v672_v24, %v767_v28  ;;  %v677_v34 = vadd.f32 %v4197_v40, %v676_v30  ;;  %v3510_v37 = vpop.f32.mrb[33].mxu0  ;;  %v4274_v38 = vld [vmem:[#allocation3 + $0x9] sm:$0xff] }
 0x127   : > { %v878_v31 = vld [vmem:[#allocation2 + $0x62] ss:$2 sm:$0x7f]  ;;  %818 = vst.msk [vmem:[#allocation2 + $0x78] sm:$0xff] %vm802_vm5, %v792_v32  ;;  %v4276_v39 = vld [vmem:[#allocation3 + $0x10] sm:$0xff]  ;;  %3543 = vmatmul.mubr.msk.f32.gmra.mrb[2].mxu1 %vm802_vm5, %v4274_v38 }
 0x128   : > { %v879_v36 = vmax.f32 %v876_v29, %v878_v31  ;;  %v881_v41 = vld [vmem:[#allocation2 + $0x63] ss:$2 sm:$0x7f]  ;;  %vm736_vm13 = vcmp.gt.f32.partialorder %v677_v34, 0.0  ;;  %v768_v43 = vmul.f32 %v4202_v42, %v677_v34  ;;  %3654 = vmatmul.mubr.msk.f32.vlgmr.msra.gmra.mrb[50].mxu0 %vm802_vm5, %v4276_v39  ;;  %3545 = vmatprep.mubr.msk.f32.mxu1 %vm3951_vm1, %v3952_v6 }
 0x129   : > { %v681_v45 = vpop.f32.mrb[34].mxu0  ;;  %3656 = vmatprep.mubr.msk.f32.mxu0 %vm3951_vm1, %v3952_v6  ;;  %3882 = vmatpush3.bf16.msk.msra.mxu0 %vm4172_vm8, %v3880_v35 }
 0x12a   : > { %v882_v44 = vmax.f32 %v879_v36, %v881_v41  ;;  %v793_v46 = vsel %vm736_vm13, %v677_v34, %v768_v43  ;;  %v682_v47 = vadd.f32 %v4197_v40, %v681_v45  ;;  %v3513_v48 = vpop.f32.mrb[35].mxu0  ;;  %3886 = vmatprep.subr.bf16.mxu0 %v3950_v3  ;;  %v3200_v45 = vld [vmem:[%s4773_s4 + $0x28] sm:$0x3] }
 0x12b   : > { %819 = vst.msk [vmem:[#allocation2 + $0x80] sm:$0xff] %vm802_vm5, %v793_v46 }
 0x12c   : > { %883 = vst.msk [vmem:[#allocation3 + $0x18] sm:$0x7f] %vm835_vm6, %v882_v44  ;;  %vm737_vm14 = vcmp.gt.f32.partialorder %v682_v47, 0.0  ;;  %v769_v49 = vmul.f32 %v4202_v42, %v682_v47  ;;  %v3199_v44 = vld [vmem:[%s4773_s4 + $0x20] sm:$0xff] }
 0x12d   : > { %v686_v50 = vpop.f32.mrb[36].mxu0 }
 0x12e   : > { %v794_v51 = vsel %vm737_vm14, %v682_v47, %v769_v49  ;;  %v687_v52 = vadd.f32 %v4197_v40, %v686_v50  ;;  %v3516_v53 = vpop.f32.mrb[37].mxu0  ;;  %v885_v55 = vld [vmem:[#allocation2 + $0x70] ss:$2 sm:$0x7f]  ;;  %v920_v50 = vld [vmem:[#allocation3] sm:$0xff]  ;;  %vm2038_vm14 = vcmask 126976  }
 0x12f   : > { %820 = vst.msk [vmem:[#allocation2 + $0x88] sm:$0xff] %vm802_vm5, %v794_v51  ;;  %v887_v57 = vld [vmem:[#allocation2 + $0x71] ss:$2 sm:$0x7f] }
 0x130   : > { %vm738_vm15 = vcmp.gt.f32.partialorder %v687_v52, 0.0  ;;  %v770_v54 = vmul.f32 %v4202_v42, %v687_v52  ;;  %v888_v0 = vmax.f32 %v885_v55, %v887_v57 }
 0x131   : > { %v691_v56 = vpop.f32.mrb[38].mxu0 }
 0x132   : > { %v795_v58 = vsel %vm738_vm15, %v687_v52, %v770_v54  ;;  %v692_v59 = vadd.f32 %v4197_v40, %v691_v56  ;;  %v3519_v62 = vpop.f32.mrb[39].mxu0  ;;  %v921_v54 = vld [vmem:[#allocation3 + $0x8] sm:$0xff] }
 0x133   : > { %v4298_v60 = vld [vmem:[#allocation3 + $0x11] sm:$0xff]  ;;  %821 = vst.msk [vmem:[#allocation2 + $0x90] sm:$0xff] %vm802_vm5, %v795_v58 }
 0x134   : > { %v4300_v61 = vld [vmem:[#allocation3 + $0x18] sm:$0xff]  ;;  %3546 = vmatmul.mubr.msk.f32.gmra.mrb[4].mxu1 %vm802_vm5, %v4298_v60  ;;  %vm739_vm0 = vcmp.gt.f32.partialorder %v692_v59, 0.0  ;;  %v771_v63 = vmul.f32 %v4202_v42, %v692_v59  ;;  %v3208_v62 = vld [vmem:[%s4773_s4 + $0x38] sm:$0x3] }
 0x135   : > { %3657 = vmatmul.mubr.msk.f32.gmra.mrb[52].mxu0 %vm802_vm5, %v4300_v61  ;;  %3548 = vmatprep.mubr.msk.f32.mxu1 %vm3951_vm1, %v3952_v6  ;;  %v696_v1 = vpop.f32.mrb[40].mxu0 }
 0x136   : > { %3659 = vmatprep.mubr.msk.f32.mxu0 %vm3951_vm1, %v3952_v6  ;;  %v890_v2 = vld [vmem:[#allocation2 + $0x7e] ss:$2 sm:$0x7f]  ;;  %v796_v4 = vsel %vm739_vm0, %v692_v59, %v771_v63  ;;  %v697_v5 = vadd.f32 %v4197_v40, %v696_v1  ;;  %v3522_v8 = vpop.f32.mrb[41].mxu0  ;;  %v3207_v59 = vld [vmem:[%s4773_s4 + $0x30] sm:$0xff]  ;;  %vm2952_vm0 = vcmask 261120  }
 0x137   : > { %v891_v7 = vmax.f32 %v888_v0, %v890_v2  ;;  %822 = vst.msk [vmem:[#allocation2 + $0x98] sm:$0xff] %vm802_vm5, %v796_v4  ;;  %v893_v9 = vld [vmem:[#allocation2 + $0x7f] ss:$2 sm:$0x7f]  ;;  %v3860_v0 = vpack.c.bf16 %v3208_v62, %v3207_v59 }
 0x138   : > { %vm740_vm2 = vcmp.gt.f32.partialorder %v697_v5, 0.0  ;;  %v772_v10 = vmul.f32 %v4202_v42, %v697_v5  ;;  %v1152_v2 = vld [vmem:[#allocation3 + $0x2] sm:$0xff]  ;;  %v4388_v4 = vld [vmem:[#allocation3 + $0x12] sm:$0xff] }
 0x139   : > { %v894_v11 = vmax.f32 %v891_v7, %v893_v9  ;;  %v701_v12 = vpop.f32.mrb[42].mxu0 }
 0x13a   : > { %v797_v13 = vsel %vm740_vm2, %v697_v5, %v772_v10  ;;  %v702_v14 = vadd.f32 %v4197_v40, %v701_v12  ;;  %v3525_v15 = vpop.f32.mrb[43].mxu0  ;;  %v1153_v5 = vld [vmem:[#allocation3 + $0xa] sm:$0xff]  ;;  %v3215_v10 = vld [vmem:[%s4773_s4 + $0x40] sm:$0xff] }
 0x13b   : > { %895 = vst.msk [vmem:[#allocation3 + $0x20] sm:$0x7f] %vm835_vm6, %v894_v11  ;;  %v3216_v11 = vld [vmem:[%s4773_s4 + $0x48] sm:$0x3]  ;;  %v3223_v15 = vld [vmem:[%s4773_s4 + $0x50] sm:$0xff] }
 0x13c   : > { %823 = vst.msk [vmem:[#allocation2 + $0xa0] sm:$0xff] %vm802_vm5, %v797_v13  ;;  %vm741_vm3 = vcmp.gt.f32.partialorder %v702_v14, 0.0  ;;  %v773_v16 = vmul.f32 %v4202_v42, %v702_v14 }
 0x13d   : > { %v706_v17 = vpop.f32.mrb[44].mxu0 }
 0x13e   : > { %v897_v18 = vld [vmem:[#allocation2 + $0x8c] ss:$2 sm:$0x7f]  ;;  %v899_v19 = vld [vmem:[#allocation2 + $0x8d] ss:$2 sm:$0x7f]  ;;  %v798_v20 = vsel %vm741_vm3, %v702_v14, %v773_v16  ;;  %v707_v21 = vadd.f32 %v4197_v40, %v706_v17  ;;  %v3864_v14 = vpack.c.bf16 %v3216_v11, %v3215_v10 }
 0x13f   : > { %824 = vst.msk [vmem:[#allocation2 + $0xa8] sm:$0xff] %vm802_vm5, %v798_v20  ;;  %v3528_v22 = vpop.f32.mrb[45].mxu0  ;;  %v900_v24 = vmax.f32 %v897_v18, %v899_v19  ;;  %v3239_v17 = vld [vmem:[%s4773_s4 + $0x70] sm:$0xff]  ;;  %v3240_v18 = vld [vmem:[%s4773_s4 + $0x78] sm:$0x3] }
 0x140   : > { %vm742_vm4 = vcmp.gt.f32.partialorder %v707_v21, 0.0  ;;  %v774_v23 = vmul.f32 %v4202_v42, %v707_v21  ;;  %v3876_v20 = vpack.c.bf16 %v3240_v18, %v3239_v17 }
 0x141   : > { %v711_v25 = vpop.f32.mrb[46].mxu0 }
 0x142   : > { %v799_v28 = vsel %vm742_vm4, %v707_v21, %v774_v23  ;;  %v712_v29 = vadd.f32 %v4197_v40, %v711_v25  ;;  %v4324_v31 = vld [vmem:[#allocation3 + $0x19] sm:$0xff]  ;;  %v3531_v34 = vpop.f32.mrb[47].mxu0  ;;  %v931_v47 = vld [vmem:[#allocation3 + $0x21] sm:$0x1f] }
 0x143   : > { %v902_v26 = vld [vmem:[#allocation2 + $0x9a] ss:$2 sm:$0x7f]  ;;  %v905_v27 = vld [vmem:[#allocation2 + $0x9b] ss:$2 sm:$0x7f]  ;;  %3549 = vmatmul.mubr.msk.f32.gmra.mrb[6].mxu1 %vm802_vm5, %v4324_v31 }
 0x144   : > { %v903_v30 = vmax.f32 %v900_v24, %v902_v26  ;;  %825 = vst.msk [vmem:[#allocation2 + $0xb0] sm:$0xff] %vm802_vm5, %v799_v28  ;;  %v4326_v32 = vld [vmem:[#allocation3 + $0x20] sm:$0xff]  ;;  %vm743_vm7 = vcmp.gt.f32.partialorder %v712_v29, 0.0  ;;  %v775_v35 = vmul.f32 %v4202_v42, %v712_v29  ;;  %3551 = vmatprep.mubr.msk.f32.mxu1 %vm3951_vm1, %v3952_v6  ;;  %v3258_v34 = vld [vmem:[%s4776_s7 + $0x18] sm:$0xff] }
 0x145   : > { %3660 = vmatmul.mubr.msk.f32.gmra.mrb[54].mxu0 %vm802_vm5, %v4326_v32  ;;  %v716_v37 = vpop.f32.mrb[48].mxu0  ;;  %v924_v63 = vld [vmem:[#allocation3 + $0x20] sm:$0x1f] }
 0x146   : > { %v906_v36 = vmax.f32 %v903_v30, %v905_v27  ;;  %3662 = vmatprep.mubr.msk.f32.mxu0 %vm3951_vm1, %v3952_v6  ;;  %v800_v41 = vsel %vm743_vm7, %v712_v29, %v775_v35  ;;  %v717_v43 = vadd.f32 %v4197_v40, %v716_v37  ;;  %v3534_v46 = vpop.f32.mrb[49].mxu0  ;;  %v3856_v40 = vpack.c.bf16 %v3200_v45, %v3199_v44  ;;  %v1879_v7 = vld [vmem:[#allocation3 + $0x1a] sm:$0xff]  ;;  %v1156_v12 = vld [vmem:[#allocation3 + $0x22] sm:$0x1f] }
 0x147   : > { %826 = vst.msk [vmem:[#allocation2 + $0xb8] sm:$0xff] %vm802_vm5, %v800_v41  ;;  %3552 = vmatmul.mubr.msk.f32.gmra.mrb[8].mxu1 %vm802_vm5, %v931_v47  ;;  %v2044_v37 = vld [vmem:[%s4776_s7 + $0x8] sm:$0xff]  ;;  %vm3048_vm7 = vcmask 48128  }
 0x148   : > { %907 = vst.msk [vmem:[#allocation3 + $0x28] sm:$0x7f] %vm835_vm6, %v906_v36  ;;  %vm744_vm9 = vcmp.gt.f32.partialorder %v717_v43, 0.0  ;;  %v776_v48 = vmul.f32 %v4202_v42, %v717_v43  ;;  %3558 = vmatprep.mubr.msk.f32.mxu1 %vm3951_vm1, %v3952_v6  ;;  %v2043_v36 = vld [vmem:[%s4776_s7] sm:$0xff] }
 0x149   : > { %v3887_v41 = vpack.c.bf16 %v2044_v37, %v2043_v36 }
 0x14a   : > { %v801_v49 = vsel %vm744_vm9, %v717_v43, %v776_v48 }
 0x14b   : > { %828 = vst.msk [vmem:[#allocation2 + $0xc0] sm:$0xf] %vm827_vm10, %v801_v49  ;;  %v909_v51 = vld [vmem:[#allocation2 + $0xa8] ss:$2 sm:$0x7f]  ;;  %3559 = vmatmul.mubr.msk.f32.vlgmr.msra.gmra.mrb[10].mxu1 %vm802_vm5, %v920_v50 }
 0x14c   : > { %v911_v52 = vld [vmem:[#allocation2 + $0xa9] ss:$2 sm:$0x7f]  ;;  %3858 = vmatpush3.bf16.msk.msra.mxu1 %vm4172_vm8, %v3856_v40  ;;  %3561 = vmatprep.mubr.msk.f32.mxu1 %vm3951_vm1, %v3952_v6 }
 0x14d   : > { %3859 = vmatprep.subr.bf16.mxu1 %v3950_v3  ;;  %v912_v53 = vmax.f32 %v909_v51, %v911_v52 }
 0x14f   : > { %v1639_v42 = vld [vmem:[#allocation3 + $0x28] sm:$0xff]  ;;  %3562 = vmatmul.mubr.msk.f32.gmra.mrb[12].mxu1 %vm802_vm5, %v921_v54 }
 0x150   : > { %3663 = vmatmul.mubr.msk.f32.gmra.mrb[56].mxu0 %vm802_vm5, %v1639_v42  ;;  %3564 = vmatprep.mubr.msk.f32.mxu1 %vm3951_vm1, %v3952_v6  ;;  %v1880_v8 = vld [vmem:[#allocation3 + $0x22] sm:$0xff]  ;;  %v1519_v33 = vld [vmem:[#allocation3 + $0x2a] sm:$0x1f] }
 0x151   : > { %3665 = vmatprep.mubr.msk.f32.mxu0 %vm3951_vm1, %v3952_v6  ;;  %v1277_v16 = vld [vmem:[#allocation3 + $0x28] sm:$0x1f] }
 0x152   : > { %v914_v55 = vld [vmem:[#allocation2 + $0xb6] ss:$2 sm:$0x7f]  ;;  %v917_v56 = vld [vmem:[#allocation2 + $0xb7] ss:$2 sm:$0x7f] }
 0x153   : > { %v915_v57 = vmax.f32 %v912_v53, %v914_v55  ;;  %3565 = vmatmul.mubr.msk.f32.gmra.mrb[14].mxu1 %vm802_vm5, %v4276_v39  ;;  %v1398_v19 = vld [vmem:[#allocation3 + $0x29] sm:$0x1f] }
 0x154   : > { %3567 = vmatprep.mubr.msk.f32.mxu1 %vm3951_vm1, %v3952_v6 }
 0x155   : > { %v918_v58 = vmax.f32 %v915_v57, %v917_v56 }
 0x157   : > { %919 = vst.msk [vmem:[#allocation3 + $0x30] sm:$0x7f] %vm835_vm6, %v918_v58  ;;  %3568 = vmatmul.mubr.msk.f32.gmra.mrb[16].mxu1 %vm802_vm5, %v4300_v61  ;;  %vm2033_vm6 = vcmask 130048  }
 0x158   : > { %3570 = vmatprep.mubr.msk.f32.mxu1 %vm3951_vm1, %v3952_v6 }
 0x15b   : > { %3571 = vmatmul.mubr.msk.f32.gmra.mrb[18].mxu1 %vm802_vm5, %v924_v63 }
 0x15c   : > { %3577 = vmatprep.mubr.msk.f32.mxu1 %vm3951_vm1, %v3952_v6 }
 0x15e   : > { %v1640_v1 = vld [vmem:[#allocation3 + $0x30] sm:$0x1f] }
 0x15f   : > { %3666 = vmatmul.mubr.msk.f32.gmra.mrb[58].mxu0 %vm802_vm5, %v1640_v1  ;;  %3578 = vmatmul.mubr.msk.f32.vlgmr.msra.gmra.mrb[20].mxu1 %vm802_vm5, %v1152_v2  ;;  %v1881_v9 = vld [vmem:[#allocation3 + $0x2a] sm:$0xff]  ;;  %v1882_v13 = vld [vmem:[#allocation3 + $0x32] sm:$0x1f] }
 0x160   : > { %3691 = vmatprep.mubr.msk.f32.mxu0 %vm3951_vm1, %v3952_v6  ;;  %3862 = vmatpush3.bf16.msk.msra.mxu1 %vm4172_vm8, %v3860_v0  ;;  %v1760_v21 = vld [vmem:[#allocation3 + $0x29] sm:$0xff] }
 0x161   : > { %3580 = vmatprep.mubr.msk.f32.mxu1 %vm3951_vm1, %v3952_v6  ;;  %3863 = vmatprep.subr.bf16.mxu1 %v3950_v3 }
 0x163   : > { %3692 = vmatmul.mubr.msk.f32.vlgmr.msra.gmra.mrb[60].mxu0 %vm802_vm5, %v4388_v4  ;;  %3581 = vmatmul.mubr.msk.f32.gmra.mrb[22].mxu1 %vm802_vm5, %v1153_v5 }
 0x164   : > { %3694 = vmatprep.mubr.msk.f32.mxu0 %vm3951_vm1, %v3952_v6  ;;  %3583 = vmatprep.mubr.msk.f32.mxu1 %vm3951_vm1, %v3952_v6 }
 0x165   : > { %3888 = vmatpush3.bf16.msra.mxu0 %v3887_v41 }
 0x166   : > { %3892 = vmatprep.subr.bf16.mxu0 %v3950_v3 }
 0x167   : > { %3695 = vmatmul.mubr.msk.f32.gmra.mrb[62].mxu0 %vm802_vm5, %v1879_v7  ;;  %3584 = vmatmul.mubr.msk.f32.gmra.mrb[24].mxu1 %vm802_vm5, %v4388_v4 }
 0x168   : > { %3697 = vmatprep.mubr.msk.f32.mxu0 %vm3951_vm1, %v3952_v6  ;;  %3586 = vmatprep.mubr.msk.f32.mxu1 %vm3951_vm1, %v3952_v6 }
 0x16b   : > { %3698 = vmatmul.mubr.msk.f32.gmra.mrb[64].mxu0 %vm802_vm5, %v1880_v8  ;;  %3587 = vmatmul.mubr.msk.f32.gmra.mrb[26].mxu1 %vm802_vm5, %v1879_v7 }
 0x16c   : > { %3700 = vmatprep.mubr.msk.f32.mxu0 %vm3951_vm1, %v3952_v6  ;;  %3589 = vmatprep.mubr.msk.f32.mxu1 %vm3951_vm1, %v3952_v6 }
 0x16f   : > { %3701 = vmatmul.mubr.msk.f32.gmra.mrb[66].mxu0 %vm802_vm5, %v1881_v9  ;;  %3590 = vmatmul.mubr.msk.f32.gmra.mrb[28].mxu1 %vm802_vm5, %v1156_v12 }
 0x170   : > { %3703 = vmatprep.mubr.msk.f32.mxu0 %vm3951_vm1, %v3952_v6  ;;  %3596 = vmatprep.mubr.msk.f32.mxu1 %vm3951_vm1, %v3952_v6 }
 0x173   : > { %3704 = vmatmul.mubr.msk.f32.gmra.mrb[68].mxu0 %vm802_vm5, %v1882_v13  ;;  %3597 = vmatmul.mubr.msk.f32.vlgmr.msra.gmra.mrb[30].mxu1 %vm802_vm5, %v921_v54 }
 0x174   : > { %3723 = vmatprep.mubr.msk.f32.mxu0 %vm3951_vm1, %v3952_v6  ;;  %3866 = vmatpush3.bf16.msk.msra.mxu1 %vm4172_vm8, %v3864_v14 }
 0x175   : > { %3599 = vmatprep.mubr.msk.f32.mxu1 %vm3951_vm1, %v3952_v6  ;;  %3867 = vmatprep.subr.bf16.mxu1 %v3950_v3 }
 0x177   : > { %3600 = vmatmul.mubr.msk.f32.gmra.mrb[32].mxu1 %vm802_vm5, %v4276_v39  ;;  %v3224_v39 = vld [vmem:[%s4773_s4 + $0x58] sm:$0x3] }
 0x178   : > { %3602 = vmatprep.mubr.msk.f32.mxu1 %vm3951_vm1, %v3952_v6 }
 0x17b   : > { %3603 = vmatmul.mubr.msk.f32.gmra.mrb[34].mxu1 %vm802_vm5, %v4300_v61  ;;  %v3868_v61 = vpack.c.bf16 %v3224_v39, %v3223_v15 }
 0x17c   : > { %3605 = vmatprep.mubr.msk.f32.mxu1 %vm3951_vm1, %v3952_v6 }
 0x17f   : > { %3606 = vmatmul.mubr.msk.f32.gmra.mrb[36].mxu1 %vm802_vm5, %v4326_v32  ;;  %v3257_v32 = vld [vmem:[%s4776_s7 + $0x10] sm:$0xff] }
 0x180   : > { %3608 = vmatprep.mubr.msk.f32.mxu1 %vm3951_vm1, %v3952_v6  ;;  %v3884_v35 = vpack.c.bf16 %v3258_v34, %v3257_v32 }
 0x183   : > { %3609 = vmatmul.mubr.msk.f32.gmra.mrb[38].mxu1 %vm802_vm5, %v1277_v16 }
 0x184   : > { %3615 = vmatprep.mubr.msk.f32.mxu1 %vm3951_vm1, %v3952_v6 }
 0x187   : > { %3616 = vmatmul.mubr.msk.f32.vlgmr.msra.gmra.mrb[40].mxu1 %vm802_vm5, %v4274_v38  ;;  %v1397_v38 = vld [vmem:[#allocation3 + $0x21] sm:$0xff] }
 0x188   : > { %3870 = vmatpush3.bf16.msk.msra.mxu1 %vm4172_vm8, %v3868_v61  ;;  %3618 = vmatprep.mubr.msk.f32.mxu1 %vm3951_vm1, %v3952_v6 }
 0x189   : > { %3875 = vmatprep.subr.bf16.mxu1 %v3950_v3 }
 0x18b   : > { %3619 = vmatmul.mubr.msk.f32.gmra.mrb[42].mxu1 %vm802_vm5, %v4298_v60 }
 0x18c   : > { %3621 = vmatprep.mubr.msk.f32.mxu1 %vm3951_vm1, %v3952_v6 }
 0x18f   : > { %3622 = vmatmul.mubr.msk.f32.gmra.mrb[44].mxu1 %vm802_vm5, %v4324_v31 }
 0x190   : > { %3624 = vmatprep.mubr.msk.f32.mxu1 %vm3951_vm1, %v3952_v6 }
 0x193   : > { %3625 = vmatmul.mubr.msk.f32.gmra.mrb[46].mxu1 %vm802_vm5, %v1397_v38 }
 0x194   : > { %3627 = vmatprep.mubr.msk.f32.mxu1 %vm3951_vm1, %v3952_v6 }
 0x197   : > { %3628 = vmatmul.mubr.msk.f32.gmra.mrb[48].mxu1 %vm802_vm5, %v1398_v19 }
 0x198   : > { %3634 = vmatprep.mubr.msk.f32.mxu1 %vm3951_vm1, %v3952_v6 }
 0x19b   : > { %3635 = vmatmul.mubr.msk.f32.vlgmr.msra.gmra.mrb[50].mxu1 %vm802_vm5, %v1153_v5 }
 0x19c   : > { %3878 = vmatpush3.bf16.msk.msra.mxu1 %vm4172_vm8, %v3876_v20  ;;  %3637 = vmatprep.mubr.msk.f32.mxu1 %vm3951_vm1, %v3952_v6 }
 0x19d   : > { %3883 = vmatprep.subr.bf16.mxu1 %v3950_v3 }
 0x19f   : > { %3638 = vmatmul.mubr.msk.f32.gmra.mrb[52].mxu1 %vm802_vm5, %v4388_v4 }
 0x1a0   : > { %3640 = vmatprep.mubr.msk.f32.mxu1 %vm3951_vm1, %v3952_v6 }
 0x1a3   : > { %3641 = vmatmul.mubr.msk.f32.gmra.mrb[54].mxu1 %vm802_vm5, %v1879_v7 }
 0x1a4   : > { %3643 = vmatprep.mubr.msk.f32.mxu1 %vm3951_vm1, %v3952_v6 }
 0x1a7   : > { %3644 = vmatmul.mubr.msk.f32.gmra.mrb[56].mxu1 %vm802_vm5, %v1880_v8 }
 0x1a8   : > { %3646 = vmatprep.mubr.msk.f32.mxu1 %vm3951_vm1, %v3952_v6 }
 0x1ab   : > { %3647 = vmatmul.mubr.msk.f32.gmra.mrb[58].mxu1 %vm802_vm5, %v1519_v33 }
 0x1ac   : > { %3672 = vmatprep.mubr.msk.f32.mxu1 %vm3951_vm1, %v3952_v6 }
 0x1af   : > { %3673 = vmatmul.mubr.msk.f32.vlgmr.msra.gmra.mrb[60].mxu1 %vm802_vm5, %v4298_v60  ;;  %v1761_v60 = vld [vmem:[#allocation3 + $0x31] sm:$0x1f] }
 0x1b0   : > { %3675 = vmatprep.mubr.msk.f32.mxu1 %vm3951_vm1, %v3952_v6  ;;  %3885 = vmatpush3.bf16.msra.mxu1 %v3884_v35 }
 0x1b1   : > { %3889 = vmatprep.subr.bf16.mxu1 %v3950_v3 }
 0x1b3   : > { %3676 = vmatmul.mubr.msk.f32.gmra.mrb[62].mxu1 %vm802_vm5, %v4324_v31 }
 0x1b4   : > { %3678 = vmatprep.mubr.msk.f32.mxu1 %vm3951_vm1, %v3952_v6 }
 0x1b7   : > { %3679 = vmatmul.mubr.msk.f32.gmra.mrb[64].mxu1 %vm802_vm5, %v1397_v38 }
 0x1b8   : > { %3681 = vmatprep.mubr.msk.f32.mxu1 %vm3951_vm1, %v3952_v6 }
 0x1bb   : > { %3682 = vmatmul.mubr.msk.f32.gmra.mrb[66].mxu1 %vm802_vm5, %v1760_v21 }
 0x1bc   : > { %3684 = vmatprep.mubr.msk.f32.mxu1 %vm3951_vm1, %v3952_v6 }
 0x1bf   : > { %3685 = vmatmul.mubr.msk.f32.gmra.mrb[68].mxu1 %vm802_vm5, %v1761_v60 }
 0x1c0   : > { %3710 = vmatprep.mubr.msk.f32.mxu1 %vm3951_vm1, %v3952_v6 }
 0x1eb   : > { %v1020_v22 = vpop.f32.mrb[0].mxu1 }
 0x1ec   : > { %v3541_v23 = vpop.f32.mrb[1].mxu1 }
 0x1fa   : > { %v1025_v24 = vpop.f32.mrb[2].mxu1 }
 0x1fb   : > { %v4516_v25 = vpop.f32.mrb[50].mxu0  ;;  %v3544_v26 = vpop.f32.mrb[3].mxu1 }
 0x1fc   : > { %v3655_v27 = vpop.f32.mrb[51].mxu0 }
 0x207   : > { %v1030_v28 = vpop.f32.mrb[4].mxu1 }
 0x208   : > { %v4518_v29 = vpop.f32.mrb[52].mxu0  ;;  %v3547_v30 = vpop.f32.mrb[5].mxu1 }
 0x209   : > { %v3658_v31 = vpop.f32.mrb[53].mxu0 }
 0x216   : > { %v1035_v43 = vpop.f32.mrb[6].mxu1 }
 0x217   : > { %v3550_v45 = vpop.f32.mrb[7].mxu1 }
 0x218   : > { %v4534_v44 = vpop.f32.mrb[54].mxu0 }
 0x219   : > { %v3661_v46 = vpop.f32.mrb[55].mxu0 }
 0x21a   : > { %v1040_v47 = vpop.f32.mrb[8].mxu1 }
 0x21b   : > { %v3553_v48 = vpop.f32.mrb[9].mxu1 }
 0x21e   : > { %v1128_v40 = vpop.f32.mrb[10].mxu1 }
 0x21f   : > { %v1129_v49 = vadd.f32 %v1128_v40, %v1020_v22  ;;  %v3560_v50 = vpop.f32.mrb[11].mxu1 }
 0x222   : > { %v1133_v52 = vpop.f32.mrb[12].mxu1 }
 0x223   : > { %v4536_v51 = vpop.f32.mrb[56].mxu0  ;;  %v1134_v53 = vadd.f32 %v1133_v52, %v1025_v24  ;;  %v3563_v54 = vpop.f32.mrb[13].mxu1 }
 0x224   : > { %v3664_v42 = vpop.f32.mrb[57].mxu0 }
 0x226   : > { %v1138_v55 = vpop.f32.mrb[14].mxu1 }
 0x227   : > { %v1139_v56 = vadd.f32 %v1138_v55, %v1030_v28  ;;  %v3566_v57 = vpop.f32.mrb[15].mxu1 }
 0x22a   : > { %v1143_v58 = vpop.f32.mrb[16].mxu1 }
 0x22b   : > { %v1144_v59 = vadd.f32 %v1143_v58, %v1035_v43  ;;  %v3569_v62 = vpop.f32.mrb[17].mxu1 }
 0x22e   : > { %v1148_v63 = vpop.f32.mrb[18].mxu1 }
 0x22f   : > { %v1149_v0 = vadd.f32 %v1148_v63, %v1040_v47  ;;  %v3572_v1 = vpop.f32.mrb[19].mxu1 }
 0x232   : > { %v4538_v2 = vpop.f32.mrb[58].mxu0  ;;  %v1244_v4 = vpop.f32.mrb[20].mxu1 }
 0x233   : > { %v3667_v5 = vpop.f32.mrb[59].mxu0  ;;  %v1268_v7 = vadd.f32 %v1244_v4, %v1129_v49  ;;  %v3579_v8 = vpop.f32.mrb[21].mxu1 }
 0x236   : > { %v4540_v9 = vpop.f32.mrb[60].mxu0  ;;  %v1249_v10 = vpop.f32.mrb[22].mxu1 }
 0x237   : > { %v3693_v11 = vpop.f32.mrb[61].mxu0  ;;  %v1269_v12 = vadd.f32 %v1249_v10, %v1134_v53  ;;  %v3582_v13 = vpop.f32.mrb[23].mxu1 }
 0x23a   : > { %v4542_v14 = vpop.f32.mrb[62].mxu0  ;;  %v1254_v15 = vpop.f32.mrb[24].mxu1 }
 0x23b   : > { %v3696_v39 = vpop.f32.mrb[63].mxu0  ;;  %v1270_v16 = vadd.f32 %v1254_v15, %v1139_v56  ;;  %v3585_v61 = vpop.f32.mrb[25].mxu1 }
 0x23e   : > { %v4544_v38 = vpop.f32.mrb[64].mxu0  ;;  %v1259_v17 = vpop.f32.mrb[26].mxu1 }
 0x23f   : > { %v3699_v18 = vpop.f32.mrb[65].mxu0  ;;  %v1271_v19 = vadd.f32 %v1259_v17, %v1144_v59  ;;  %v3588_v20 = vpop.f32.mrb[27].mxu1 }
 0x242   : > { %v4546_v33 = vpop.f32.mrb[66].mxu0  ;;  %v1264_v21 = vpop.f32.mrb[28].mxu1 }
 0x243   : > { %v3702_v60 = vpop.f32.mrb[67].mxu0  ;;  %v1272_v22 = vadd.f32 %v1264_v21, %v1149_v0  ;;  %v3591_v23 = vpop.f32.mrb[29].mxu1 }
 0x246   : > { %v4548_v24 = vpop.f32.mrb[68].mxu0  ;;  %v1365_v26 = vpop.f32.mrb[30].mxu1 }
 0x247   : > { %v3705_v27 = vpop.f32.mrb[69].mxu0  ;;  %v1389_v28 = vadd.f32 %v1365_v26, %v1268_v7  ;;  %v3598_v30 = vpop.f32.mrb[31].mxu1 }
 0x24a   : > { %v1370_v31 = vpop.f32.mrb[32].mxu1 }
 0x24b   : > { %v1390_v32 = vadd.f32 %v1370_v31, %v1269_v12  ;;  %v3601_v34 = vpop.f32.mrb[33].mxu1 }
 0x24e   : > { %v1375_v35 = vpop.f32.mrb[34].mxu1 }
 0x24f   : > { %v1391_v36 = vadd.f32 %v1375_v35, %v1270_v16  ;;  %v3604_v37 = vpop.f32.mrb[35].mxu1 }
 0x252   : > { %v1380_v41 = vpop.f32.mrb[36].mxu1 }
 0x253   : > { %v1392_v43 = vadd.f32 %v1380_v41, %v1271_v19  ;;  %v3607_v45 = vpop.f32.mrb[37].mxu1 }
 0x256   : > { %v1385_v46 = vpop.f32.mrb[38].mxu1 }
 0x257   : > { %v1393_v47 = vadd.f32 %v1385_v46, %v1272_v22  ;;  %v3610_v48 = vpop.f32.mrb[39].mxu1  ;;  %v3270_v46 = vld [vmem:[%s4776_s7 + $0x30] sm:$0xff] }
 0x25a   : > { %v1486_v40 = vpop.f32.mrb[40].mxu1 }
 0x25b   : > { %v1510_v49 = vadd.f32 %v1486_v40, %v1389_v28  ;;  %v3617_v50 = vpop.f32.mrb[41].mxu1 }
 0x25e   : > { %v1491_v52 = vpop.f32.mrb[42].mxu1 }
 0x25f   : > { %v1511_v42 = vadd.f32 %v1491_v52, %v1390_v32  ;;  %v3620_v53 = vpop.f32.mrb[43].mxu1 }
 0x260   : > { %v3265_v53 = vld [vmem:[%s4776_s7 + $0x20] sm:$0xff] }
 0x262   : > { %v1496_v54 = vpop.f32.mrb[44].mxu1 }
 0x263   : > { %v1512_v55 = vadd.f32 %v1496_v54, %v1391_v36  ;;  %v3623_v56 = vpop.f32.mrb[45].mxu1  ;;  %v3266_v54 = vld [vmem:[%s4776_s7 + $0x28] sm:$0xff] }
 0x266   : > { %v1501_v57 = vpop.f32.mrb[46].mxu1 }
 0x267   : > { %v1513_v58 = vadd.f32 %v1501_v57, %v1392_v43  ;;  %v3626_v59 = vpop.f32.mrb[47].mxu1 }
 0x26a   : > { %v1506_v62 = vpop.f32.mrb[48].mxu1 }
 0x26b   : > { %v1514_v63 = vadd.f32 %v1506_v62, %v1393_v47  ;;  %v3629_v0 = vpop.f32.mrb[49].mxu1 }
 0x26e   : > { %v1607_v1 = vpop.f32.mrb[50].mxu1 }
 0x26f   : > { %v1631_v4 = vadd.f32 %v1607_v1, %v1510_v49  ;;  %v3636_v5 = vpop.f32.mrb[51].mxu1 }
 0x271   : > { %v1752_v7 = vadd.f32 %v4516_v25, %v1631_v4 }
 0x272   : > { %v1612_v8 = vpop.f32.mrb[52].mxu1 }
 0x273   : > { %v1632_v10 = vadd.f32 %v1612_v8, %v1511_v42  ;;  %v3639_v11 = vpop.f32.mrb[53].mxu1 }
 0x275   : > { %v1753_v12 = vadd.f32 %v4518_v29, %v1632_v10  ;;  %v3255_v29 = vld [vmem:[%s4774_s5] ss:$0 sm:$0xff] }
 0x276   : > { %v1617_v13 = vpop.f32.mrb[54].mxu1 }
 0x277   : > { %v1633_v15 = vadd.f32 %v1617_v13, %v1512_v55  ;;  %v3642_v39 = vpop.f32.mrb[55].mxu1  ;;  %v3275_v13 = vld [vmem:[%s4776_s7 + $0x40] sm:$0xff] }
 0x279   : > { %v1754_v16 = vadd.f32 %v4534_v44, %v1633_v15  ;;  %v3256_v44 = vld [vmem:[%s4775_s6] ss:$0 sm:$0xff]  ;;  %v3276_v15 = vld [vmem:[%s4776_s7 + $0x48] sm:$0xff] }
 0x27a   : > { %v1622_v61 = vpop.f32.mrb[56].mxu1 }
 0x27b   : > { %v1634_v17 = vadd.f32 %v1622_v61, %v1513_v58  ;;  %v3645_v18 = vpop.f32.mrb[57].mxu1  ;;  %v3896_v61 = vpack.c.bf16 %v3276_v15, %v3275_v13 }
 0x27d   : > { %v1755_v19 = vadd.f32 %v4536_v51, %v1634_v17 }
 0x27e   : > { %v1627_v20 = vpop.f32.mrb[58].mxu1 }
 0x27f   : > { %v1635_v21 = vadd.f32 %v1627_v20, %v1514_v63  ;;  %v3648_v60 = vpop.f32.mrb[59].mxu1  ;;  %v3890_v63 = vpack.c.bf16 %v3266_v54, %v3265_v53 }
 0x280   : > { %v3291_v60 = vld [vmem:[%s4776_s7 + $0x78] sm:$0xff] }
 0x281   : > { %v1756_v25 = vadd.f32 %v4538_v2, %v1635_v21 }
 0x282   : > { %v1849_v22 = vpop.f32.mrb[60].mxu1 }
 0x283   : > { %v1873_v23 = vadd.f32 %v1849_v22, %v1752_v7  ;;  %v3674_v26 = vpop.f32.mrb[61].mxu1  ;;  %v3286_v22 = vld [vmem:[%s4776_s7 + $0x68] sm:$0xff] }
 0x285   : > { %v1994_v27 = vadd.f32 %v4540_v9, %v1873_v23 }
 0x286   : > { %v1854_v28 = vpop.f32.mrb[62].mxu1 }
 0x287   : > { %v2006_v51 = vadd.f32 %v3255_v29, %v1994_v27  ;;  %v1874_v30 = vadd.f32 %v1854_v28, %v1753_v12  ;;  %v3677_v31 = vpop.f32.mrb[63].mxu1  ;;  %v3281_v12 = vld [vmem:[%s4776_s7 + $0x58] sm:$0xff] }
 0x289   : > { %vm2011_vm5 = vcmp.gt.f32.partialorder %v2006_v51, 0.0  ;;  %v2023_v32 = vmul.f32 %v3256_v44, %v2006_v51  ;;  %v1995_v2 = vadd.f32 %v4542_v14, %v1874_v30  ;;  %v3271_v14 = vld [vmem:[%s4776_s7 + $0x38] sm:$0xff]  ;;  %v3296_v30 = vld [vmem:[%s4776_s7 + $0x88] sm:$0xff] }
 0x28a   : > { %v1859_v34 = vpop.f32.mrb[64].mxu1 }
 0x28b   : > { %v2028_v35 = vsel %vm2011_vm5, %v2006_v51, %v2023_v32  ;;  %v2007_v36 = vadd.f32 %v3255_v29, %v1995_v2  ;;  %v1875_v37 = vadd.f32 %v1859_v34, %v1754_v16  ;;  %v3680_v41 = vpop.f32.mrb[65].mxu1  ;;  %v3295_v51 = vld [vmem:[%s4776_s7 + $0x80] sm:$0xff] }
 0x28c   : > { %2034 = vst.msk [vmem:[#allocation4] sm:$0xff] %vm2033_vm6, %v2028_v35  ;;  %v3908_v32 = vpack.c.bf16 %v3296_v30, %v3295_v51 }
 0x28d   : > { %vm2012_vm8 = vcmp.gt.f32.partialorder %v2007_v36, 0.0  ;;  %v2024_v9 = vmul.f32 %v3256_v44, %v2007_v36  ;;  %v1996_v43 = vadd.f32 %v4544_v38, %v1875_v37  ;;  %v3893_v38 = vpack.c.bf16 %v3271_v14, %v3270_v46  ;;  %v2943_v46 = vld [vmem:[%s4779_s10 + $0x10] sm:$0xff]  ;;  %v2944_v14 = vld [vmem:[%s4779_s10 + $0x18] sm:$0xff] }
 0x28e   : > { %v1864_v45 = vpop.f32.mrb[66].mxu1 }
 0x28f   : > { %v2029_v47 = vsel %vm2012_vm8, %v2007_v36, %v2024_v9  ;;  %v2008_v48 = vadd.f32 %v3255_v29, %v1996_v43  ;;  %v1876_v40 = vadd.f32 %v1864_v45, %v1755_v19  ;;  %v3683_v49 = vpop.f32.mrb[67].mxu1  ;;  %v3290_v19 = vld [vmem:[%s4776_s7 + $0x70] sm:$0xff]  ;;  %v2941_v9 = vld [vmem:[%s4779_s10] sm:$0xff]  ;;  %v2942_v43 = vld [vmem:[%s4779_s10 + $0x8] sm:$0xff] }
 0x290   : > { %2035 = vst.msk [vmem:[#allocation4 + $0x8] sm:$0xff] %vm2033_vm6, %v2029_v47  ;;  %v3905_v23 = vpack.c.bf16 %v3291_v60, %v3290_v19  ;;  %v3911_v45 = vpack.c.bf16 %v2942_v43, %v2941_v9  ;;  %v3914_v47 = vpack.c.bf16 %v2944_v14, %v2943_v46 }
 0x291   : > { %vm2013_vm11 = vcmp.gt.f32.partialorder %v2008_v48, 0.0  ;;  %v2025_v50 = vmul.f32 %v3256_v44, %v2008_v48  ;;  %v1997_v52 = vadd.f32 %v4546_v33, %v1876_v40 }
 0x292   : > { %v1869_v42 = vpop.f32.mrb[68].mxu1 }
 0x293   : > { %v2030_v55 = vsel %vm2013_vm11, %v2008_v48, %v2025_v50  ;;  %v2009_v56 = vadd.f32 %v3255_v29, %v1997_v52  ;;  %v1877_v57 = vadd.f32 %v1869_v42, %v1756_v25  ;;  %v3686_v58 = vpop.f32.mrb[69].mxu1  ;;  %v2040_v59 = vld [vmem:[#allocation4] sm:$0xff] }
 0x294   : > { %2036 = vst.msk [vmem:[#allocation4 + $0x10] sm:$0xff] %vm2033_vm6, %v2030_v55  ;;  %3724 = vmatmul.mubr.msk.f32.vlgmr.msra.gmra.mrb[70].mxu0 %vm2033_vm6, %v2040_v59  ;;  %v3285_v25 = vld [vmem:[%s4776_s7 + $0x60] sm:$0xff] }
 0x295   : > { %vm2014_vm12 = vcmp.gt.f32.partialorder %v2009_v56, 0.0  ;;  %v2026_v33 = vmul.f32 %v3256_v44, %v2009_v56  ;;  %v1998_v62 = vadd.f32 %v4548_v24, %v1877_v57  ;;  %3726 = vmatprep.mubr.msk.f32.mxu0 %vm3951_vm1, %v3952_v6  ;;  %3894 = vmatpush3.bf16.msra.mxu0 %v3893_v38  ;;  %v3280_v24 = vld [vmem:[%s4776_s7 + $0x50] sm:$0xff] }
 0x296   : > { %3898 = vmatprep.subr.bf16.mxu0 %v3950_v3  ;;  %v3899_v39 = vpack.c.bf16 %v3281_v12, %v3280_v24 }
 0x297   : > { %v2031_v0 = vsel %vm2014_vm12, %v2009_v56, %v2026_v33  ;;  %v2010_v1 = vadd.f32 %v3255_v29, %v1998_v62  ;;  %v2045_v4 = vld [vmem:[#allocation4 + $0x1] sm:$0xff]  ;;  %v3902_v29 = vpack.c.bf16 %v3286_v22, %v3285_v25 }
 0x298   : > { %v2041_v5 = vld [vmem:[#allocation4 + $0x8] sm:$0xff]  ;;  %2037 = vst.msk [vmem:[#allocation4 + $0x18] sm:$0xff] %vm2033_vm6, %v2031_v0  ;;  %3711 = vmatmul.mubr.msk.f32.vlgmr.msra.gmra.mrb[70].mxu1 %vm2033_vm6, %v2045_v4 }
 0x299   : > { %3727 = vmatmul.mubr.msk.f32.gmra.mrb[72].mxu0 %vm2033_vm6, %v2041_v5  ;;  %vm2015_vm13 = vcmp.gt.f32.partialorder %v2010_v1, 0.0  ;;  %v2027_v7 = vmul.f32 %v3256_v44, %v2010_v1  ;;  %3891 = vmatpush3.bf16.msra.mxu1 %v3890_v63  ;;  %v2229_v17 = vld [vmem:[#allocation4 + $0x2] sm:$0xff] }
 0x29a   : > { %3713 = vmatprep.mubr.msk.f32.mxu1 %vm3951_vm1, %v3952_v6  ;;  %3729 = vmatprep.mubr.msk.f32.mxu0 %vm3951_vm1, %v3952_v6 }
 0x29b   : > { %3895 = vmatprep.subr.bf16.mxu1 %v3950_v3  ;;  %v2032_v8 = vsel %vm2015_vm13, %v2010_v1, %v2027_v7  ;;  %v2046_v10 = vld [vmem:[#allocation4 + $0x9] sm:$0xff]  ;;  %v2047_v16 = vld [vmem:[#allocation4 + $0x11] sm:$0x7] }
 0x29c   : > { %v2042_v11 = vld [vmem:[#allocation4 + $0x10] sm:$0x7]  ;;  %2039 = vst.msk [vmem:[#allocation4 + $0x20] sm:$0x1f] %vm2038_vm14, %v2032_v8  ;;  %3714 = vmatmul.mubr.msk.f32.gmra.mrb[72].mxu1 %vm2033_vm6, %v2046_v10 }
 0x29d   : > { %3730 = vmatmul.mubr.msk.f32.gmra.mrb[74].mxu0 %vm2033_vm6, %v2042_v11  ;;  %3716 = vmatprep.mubr.msk.f32.mxu1 %vm3951_vm1, %v3952_v6  ;;  %v2328_v18 = vld [vmem:[#allocation4 + $0x10] sm:$0xff] }
 0x29e   : > { %3749 = vmatprep.mubr.msk.f32.mxu0 %vm3951_vm1, %v3952_v6  ;;  %v2230_v20 = vld [vmem:[#allocation4 + $0xa] sm:$0xff]  ;;  %v2231_v26 = vld [vmem:[#allocation4 + $0x12] sm:$0x7] }
 0x29f   : > { %v2329_v21 = vld [vmem:[#allocation4 + $0x18] sm:$0x7] }
 0x2a0   : > { %3717 = vmatmul.mubr.msk.f32.gmra.mrb[74].mxu1 %vm2033_vm6, %v2047_v16  ;;  %v2524_v27 = vld [vmem:[#allocation4 + $0x12] sm:$0xff]  ;;  %v2525_v28 = vld [vmem:[#allocation4 + $0x1a] sm:$0x7] }
 0x2a1   : > { %3750 = vmatmul.mubr.msk.f32.vlgmr.msra.gmra.mrb[76].mxu0 %vm2033_vm6, %v2041_v5  ;;  %3736 = vmatprep.mubr.msk.f32.mxu1 %vm3951_vm1, %v3952_v6  ;;  %v2426_v44 = vld [vmem:[#allocation4 + $0x11] sm:$0xff]  ;;  %v2427_v31 = vld [vmem:[#allocation4 + $0x19] sm:$0x7] }
 0x2a2   : > { %3752 = vmatprep.mubr.msk.f32.mxu0 %vm3951_vm1, %v3952_v6  ;;  %3900 = vmatpush3.bf16.msra.mxu0 %v3899_v39  ;;  %v2622_v34 = vld [vmem:[#allocation4 + $0x18] sm:$0xff] }
 0x2a3   : > { %3904 = vmatprep.subr.bf16.mxu0 %v3950_v3  ;;  %v2720_v2 = vld [vmem:[#allocation4 + $0x19] sm:$0xff]  ;;  %v2721_v35 = vld [vmem:[#allocation4 + $0x21] sm:$0x7] }
 0x2a4   : > { %3737 = vmatmul.mubr.msk.f32.vlgmr.msra.gmra.mrb[76].mxu1 %vm2033_vm6, %v2229_v17  ;;  %v2623_v36 = vld [vmem:[#allocation4 + $0x20] sm:$0x7] }
 0x2a5   : > { %3753 = vmatmul.mubr.msk.f32.gmra.mrb[78].mxu0 %vm2033_vm6, %v2328_v18  ;;  %3897 = vmatpush3.bf16.msra.mxu1 %v3896_v61  ;;  %v2818_v37 = vld [vmem:[#allocation4 + $0x1a] sm:$0xff]  ;;  %v2819_v41 = vld [vmem:[#allocation4 + $0x22] sm:$0x7] }
 0x2a6   : > { %3739 = vmatprep.mubr.msk.f32.mxu1 %vm3951_vm1, %v3952_v6  ;;  %3755 = vmatprep.mubr.msk.f32.mxu0 %vm3951_vm1, %v3952_v6 }
 0x2a7   : > { %3901 = vmatprep.subr.bf16.mxu1 %v3950_v3 }
 0x2a8   : > { %3740 = vmatmul.mubr.msk.f32.gmra.mrb[78].mxu1 %vm2033_vm6, %v2230_v20 }
 0x2a9   : > { %3756 = vmatmul.mubr.msk.f32.gmra.mrb[80].mxu0 %vm2033_vm6, %v2329_v21  ;;  %3742 = vmatprep.mubr.msk.f32.mxu1 %vm3951_vm1, %v3952_v6 }
 0x2aa   : > { %3775 = vmatprep.mubr.msk.f32.mxu0 %vm3951_vm1, %v3952_v6 }
 0x2ac   : > { %3743 = vmatmul.mubr.msk.f32.gmra.mrb[80].mxu1 %vm2033_vm6, %v2231_v26 }
 0x2ad   : > { %3776 = vmatmul.mubr.msk.f32.vlgmr.msra.gmra.mrb[82].mxu0 %vm2033_vm6, %v2230_v20  ;;  %3762 = vmatprep.mubr.msk.f32.mxu1 %vm3951_vm1, %v3952_v6 }
 0x2ae   : > { %3778 = vmatprep.mubr.msk.f32.mxu0 %vm3951_vm1, %v3952_v6  ;;  %3906 = vmatpush3.bf16.msra.mxu0 %v3905_v23 }
 0x2af   : > { %3910 = vmatprep.subr.bf16.mxu0 %v3950_v3 }
 0x2b0   : > { %3763 = vmatmul.mubr.msk.f32.vlgmr.msra.gmra.mrb[82].mxu1 %vm2033_vm6, %v2046_v10 }
 0x2b1   : > { %3779 = vmatmul.mubr.msk.f32.gmra.mrb[84].mxu0 %vm2033_vm6, %v2524_v27  ;;  %3903 = vmatpush3.bf16.msra.mxu1 %v3902_v29 }
 0x2b2   : > { %3765 = vmatprep.mubr.msk.f32.mxu1 %vm3951_vm1, %v3952_v6  ;;  %3781 = vmatprep.mubr.msk.f32.mxu0 %vm3951_vm1, %v3952_v6 }
 0x2b3   : > { %3907 = vmatprep.subr.bf16.mxu1 %v3950_v3 }
 0x2b4   : > { %3766 = vmatmul.mubr.msk.f32.gmra.mrb[84].mxu1 %vm2033_vm6, %v2426_v44 }
 0x2b5   : > { %3782 = vmatmul.mubr.msk.f32.gmra.mrb[86].mxu0 %vm2033_vm6, %v2525_v28  ;;  %3768 = vmatprep.mubr.msk.f32.mxu1 %vm3951_vm1, %v3952_v6 }
 0x2b6   : > { %3801 = vmatprep.mubr.msk.f32.mxu0 %vm3951_vm1, %v3952_v6 }
 0x2b8   : > { %3769 = vmatmul.mubr.msk.f32.gmra.mrb[86].mxu1 %vm2033_vm6, %v2427_v31 }
 0x2b9   : > { %3802 = vmatmul.mubr.msk.f32.vlgmr.msra.gmra.mrb[88].mxu0 %vm2033_vm6, %v2426_v44  ;;  %3788 = vmatprep.mubr.msk.f32.mxu1 %vm3951_vm1, %v3952_v6 }
 0x2ba   : > { %3804 = vmatprep.mubr.msk.f32.mxu0 %vm3951_vm1, %v3952_v6  ;;  %3912 = vmatpush3.bf16.msra.mxu0 %v3911_v45 }
 0x2bb   : > { %3913 = vmatprep.subr.bf16.mxu0 %v3950_v3 }
 0x2bc   : > { %3789 = vmatmul.mubr.msk.f32.vlgmr.msra.gmra.mrb[88].mxu1 %vm2033_vm6, %v2328_v18 }
 0x2bd   : > { %3805 = vmatmul.mubr.msk.f32.gmra.mrb[90].mxu0 %vm2033_vm6, %v2720_v2  ;;  %3909 = vmatpush3.bf16.msra.mxu1 %v3908_v32 }
 0x2be   : > { %3791 = vmatprep.mubr.msk.f32.mxu1 %vm3951_vm1, %v3952_v6  ;;  %3807 = vmatprep.mubr.msk.f32.mxu0 %vm3951_vm1, %v3952_v6 }
 0x2bf   : > { %3915 = vmatpush3.bf16.msra.mxu0 %v3914_v47 }
 0x2c0   : > { %3792 = vmatmul.mubr.msk.f32.gmra.mrb[90].mxu1 %vm2033_vm6, %v2622_v34 }
 0x2c1   : > { %3808 = vmatmul.mubr.msk.f32.gmra.mrb[92].mxu0 %vm2033_vm6, %v2721_v35  ;;  %3794 = vmatprep.mubr.msk.f32.mxu1 %vm3951_vm1, %v3952_v6 }
 0x2c2   : > { %3831 = vmatprep.mubr.msk.f32.mxu0 %vm3951_vm1, %v3952_v6 }
 0x2c4   : > { %3795 = vmatmul.mubr.msk.f32.gmra.mrb[92].mxu1 %vm2033_vm6, %v2623_v36 }
 0x2c5   : > { %3814 = vmatprep.mubr.msk.f32.mxu1 %vm3951_vm1, %v3952_v6 }
 0x2c8   : > { %3815 = vmatmul.mubr.msk.f32.vlgmr.msra.gmra.mrb[94].mxu1 %vm2033_vm6, %v2524_v27 }
 0x2c9   : > { %3817 = vmatprep.mubr.msk.f32.mxu1 %vm3951_vm1, %v3952_v6 }
 0x2cc   : > { %3818 = vmatmul.mubr.msk.f32.gmra.mrb[96].mxu1 %vm2033_vm6, %v2818_v37 }
 0x2cd   : > { %3820 = vmatprep.mubr.msk.f32.mxu1 %vm3951_vm1, %v3952_v6 }
 0x2d0   : > { %3821 = vmatmul.mubr.msk.f32.gmra.mrb[98].mxu1 %vm2033_vm6, %v2819_v41 }
 0x367   : > { %v2215_v48 = vpop.f32.mrb[70].mxu0 }
 0x368   : > { %v3725_v40 = vpop.f32.mrb[71].mxu0 }
 0x36b   : > { %v2126_v49 = vpop.f32.mrb[70].mxu1 }
 0x36c   : > { %v2220_v50 = vpop.f32.mrb[72].mxu0  ;;  %v2216_v52 = vadd.f32 %v2215_v48, %v2126_v49  ;;  %v3712_v38 = vpop.f32.mrb[71].mxu1 }
 0x36d   : > { %v3728_v42 = vpop.f32.mrb[73].mxu0 }
 0x36f   : > { %v2131_v53 = vpop.f32.mrb[72].mxu1 }
 0x370   : > { %v2225_v54 = vpop.f32.mrb[74].mxu0  ;;  %v2221_v3 = vadd.f32 %v2220_v50, %v2131_v53  ;;  %v3715_v55 = vpop.f32.mrb[73].mxu1  ;;  %v3300_v53 = vld [vmem:[%s4777_s8] ss:$0 sm:$0xff] }
 0x371   : > { %v3731_v56 = vpop.f32.mrb[75].mxu0  ;;  %v3301_v55 = vld [vmem:[%s4778_s9] ss:$0 sm:$0xff] }
 0x373   : > { %v2136_v57 = vpop.f32.mrb[74].mxu1 }
 0x374   : > { %v2408_v58 = vpop.f32.mrb[76].mxu0  ;;  %v2226_v59 = vadd.f32 %v2225_v54, %v2136_v57  ;;  %v3718_v33 = vpop.f32.mrb[75].mxu1 }
 0x375   : > { %v3751_v62 = vpop.f32.mrb[77].mxu0 }
 0x377   : > { %v2310_v63 = vpop.f32.mrb[76].mxu1 }
 0x378   : > { %v2413_v0 = vpop.f32.mrb[78].mxu0  ;;  %v2324_v1 = vadd.f32 %v2310_v63, %v2216_v52  ;;  %v3738_v4 = vpop.f32.mrb[77].mxu1 }
 0x379   : > { %v3754_v5 = vpop.f32.mrb[79].mxu0 }
 0x37a   : > { %v2422_v7 = vadd.f32 %v2408_v58, %v2324_v1 }
 0x37b   : > { %v2315_v24 = vpop.f32.mrb[78].mxu1 }
 0x37c   : > { %v2418_v8 = vpop.f32.mrb[80].mxu0  ;;  %v2325_v10 = vadd.f32 %v2315_v24, %v2221_v3  ;;  %v3741_v11 = vpop.f32.mrb[79].mxu1 }
 0x37d   : > { %v3757_v12 = vpop.f32.mrb[81].mxu0  ;;  %v3042_v11 = vlaneseq }
 0x37e   : > { %v2423_v13 = vadd.f32 %v2413_v0, %v2325_v10 }
 0x37f   : > { %v2320_v15 = vpop.f32.mrb[80].mxu1  ;;  %v4723_v12 = vand.u32 127, %v3042_v11 }
 0x380   : > { %v2604_v39 = vpop.f32.mrb[82].mxu0  ;;  %v2326_v16 = vadd.f32 %v2320_v15, %v2226_v59  ;;  %v3744_v61 = vpop.f32.mrb[81].mxu1 }
 0x381   : > { %v3777_v17 = vpop.f32.mrb[83].mxu0  ;;  %vm3044_vm4 = vcmp.lt.s32.totalorder %v4723_v12, 2 }
 0x382   : > { %v2424_v18 = vadd.f32 %v2418_v8, %v2326_v16 }
 0x383   : > { %v2506_v19 = vpop.f32.mrb[82].mxu1 }
 0x384   : > { %v2609_v20 = vpop.f32.mrb[84].mxu0  ;;  %v2520_v21 = vadd.f32 %v2506_v19, %v2422_v7  ;;  %v3764_v60 = vpop.f32.mrb[83].mxu1 }
 0x385   : > { %v3780_v25 = vpop.f32.mrb[85].mxu0 }
 0x386   : > { %v2618_v22 = vadd.f32 %v2604_v39, %v2520_v21 }
 0x387   : > { %v2511_v23 = vpop.f32.mrb[84].mxu1 }
 0x388   : > { %v2614_v26 = vpop.f32.mrb[86].mxu0  ;;  %v2521_v29 = vadd.f32 %v2511_v23, %v2423_v13  ;;  %v3767_v27 = vpop.f32.mrb[85].mxu1  ;;  %v3302_v13 = vld [vmem:[%s4780_s11] ss:$0 sm:$0xff] }
 0x389   : > { %v3783_v44 = vpop.f32.mrb[87].mxu0 }
 0x38a   : > { %v2619_v28 = vadd.f32 %v2609_v20, %v2521_v29 }
 0x38b   : > { %v2516_v51 = vpop.f32.mrb[86].mxu1 }
 0x38c   : > { %v2800_v30 = vpop.f32.mrb[88].mxu0  ;;  %v2522_v31 = vadd.f32 %v2516_v51, %v2424_v18  ;;  %v3770_v32 = vpop.f32.mrb[87].mxu1 }
 0x38d   : > { %v3803_v2 = vpop.f32.mrb[89].mxu0 }
 0x38e   : > { %v2620_v34 = vadd.f32 %v2614_v26, %v2522_v31 }
 0x38f   : > { %v2702_v35 = vpop.f32.mrb[88].mxu1 }
 0x390   : > { %v2805_v36 = vpop.f32.mrb[90].mxu0  ;;  %v2716_v37 = vadd.f32 %v2702_v35, %v2618_v22  ;;  %v3790_v41 = vpop.f32.mrb[89].mxu1 }
 0x391   : > { %v3806_v9 = vpop.f32.mrb[91].mxu0 }
 0x392   : > { %v2814_v43 = vadd.f32 %v2800_v30, %v2716_v37 }
 0x393   : > { %v2707_v45 = vpop.f32.mrb[90].mxu1 }
 0x394   : > { %v2810_v46 = vpop.f32.mrb[92].mxu0  ;;  %v2717_v14 = vadd.f32 %v2707_v45, %v2619_v28  ;;  %v3793_v47 = vpop.f32.mrb[91].mxu1 }
 0x395   : > { %v3809_v48 = vpop.f32.mrb[93].mxu0 }
 0x396   : > { %v2815_v40 = vadd.f32 %v2805_v36, %v2717_v14 }
 0x397   : > { %v2712_v49 = vpop.f32.mrb[92].mxu1 }
 0x398   : > { %v2718_v50 = vadd.f32 %v2712_v49, %v2620_v34  ;;  %v3796_v52 = vpop.f32.mrb[93].mxu1 }
 0x39a   : > { %v2816_v38 = vadd.f32 %v2810_v46, %v2718_v50 }
 0x39b   : > { %v2898_v42 = vpop.f32.mrb[94].mxu1 }
 0x39c   : > { %v2912_v54 = vadd.f32 %v2898_v42, %v2814_v43  ;;  %v3816_v3 = vpop.f32.mrb[95].mxu1 }
 0x39e   : > { %v2922_v56 = vadd.f32 %v3300_v53, %v2912_v54 }
 0x39f   : > { %v2903_v57 = vpop.f32.mrb[96].mxu1 }
 0x3a0   : > { %vm2925_vm15 = vcmp.gt.f32.partialorder %v2922_v56, 0.0  ;;  %v2935_v58 = vmul.f32 %v3301_v55, %v2922_v56  ;;  %v2913_v59 = vadd.f32 %v2903_v57, %v2815_v40  ;;  %v3819_v33 = vpop.f32.mrb[97].mxu1 }
 0x3a2   : > { %v2938_v62 = vsel %vm2925_vm15, %v2922_v56, %v2935_v58  ;;  %v2923_v63 = vadd.f32 %v3300_v53, %v2913_v59 }
 0x3a3   : > { %v2908_v0 = vpop.f32.mrb[98].mxu1  ;;  %3832 = vmatmul.mubr.msk.f32.vlgmr.msra.gmra.mrb[94].mxu0 %vm2952_vm0, %v2938_v62 }
 0x3a4   : > { %v2936_v1 = vmul.f32 %v3301_v55, %v2923_v63  ;;  %v2914_v4 = vadd.f32 %v2908_v0, %v2816_v38  ;;  %v3822_v5 = vpop.f32.mrb[99].mxu1  ;;  %3834 = vmatprep.mubr.msk.f32.mxu0 %vm3951_vm1, %v3952_v6  ;;  %vm2926_vm2 = vcmp.gt.f32.partialorder %v2923_v63, 0.0 }
 0x3a6   : > { %v2924_v7 = vadd.f32 %v3300_v53, %v2914_v4  ;;  %v2939_v24 = vsel %vm2926_vm2, %v2923_v63, %v2936_v1 }
 0x3a7   : > { %3835 = vmatmul.mubr.msk.f32.gmra.mrb[96].mxu0 %vm2952_vm0, %v2939_v24 }
 0x3a8   : > { %v2937_v8 = vmul.f32 %v3301_v55, %v2924_v7  ;;  %3837 = vmatprep.mubr.msk.f32.mxu0 %vm3951_vm1, %v3952_v6  ;;  %vm2927_vm3 = vcmp.gt.f32.partialorder %v2924_v7, 0.0  ;;  %vm3055_vm1 = vcmask 43008  }
 0x3aa   : > { %v2940_v10 = vsel %vm2927_vm3, %v2924_v7, %v2937_v8 }
 0x3ab   : > { %3838 = vmatmul.mubr.msk.f32.gmra.mrb[98].mxu0 %vm2952_vm0, %v2940_v10 }
 0x476   : > { %v3028_v15 = vpop.f32.mrb[94].mxu0 }
 0x477   : > { %v3029_v39 = vadd.f32 %v3302_v13, %v3028_v15  ;;  %v3833_v16 = vpop.f32.mrb[95].mxu0 }
 0x479   : > { %v3045_v6 = vsel %vm3044_vm4, %v3029_v39, -inf }
 0x47a   : > { %v3033_v61 = vpop.f32.mrb[96].mxu0  ;;  %v3049_v17 = vsel %vm3048_vm7, %v3045_v6, -inf }
 0x47b   : > { %v3034_v18 = vadd.f32 %v3302_v13, %v3033_v61  ;;  %3050 = vmax.xlane.f32.xlu0 %v3049_v17  ;;  %v3836_v19 = vpop.f32.mrb[97].mxu0 }
 0x47d   : > { %v3046_v20 = vsel %vm3044_vm4, %v3034_v18, -inf }
 0x47e   : > { %v3038_v21 = vpop.f32.mrb[98].mxu0  ;;  %v3052_v60 = vsel %vm3048_vm7, %v3046_v20, -inf }
 0x47f   : > { %v3039_v25 = vadd.f32 %v3302_v13, %v3038_v21  ;;  %3053 = vmax.xlane.f32.xlu0 %v3052_v60  ;;  %v3839_v22 = vpop.f32.mrb[99].mxu0 }
 0x481   : > { %v3047_v23 = vsel %vm3044_vm4, %v3039_v25, -inf }
 0x482   : > { %v3056_v26 = vsel %vm3055_vm1, %v3047_v23, -inf }
 0x483   : > { %3057 = vmax.xlane.f32.xlu1 %v3056_v26 }
 0x508   : > { %v3051_v29 = vpop.xlane.xlu0 %3050 }
 0x509   : > { %v3059_v27 = vsub.f32 %v3029_v39, %v3051_v29 }
 0x50b   : > { %v3062_v44 = vsel %vm3044_vm4, %v3059_v27, 0.0 }
 0x50c   : > { %v3065_v28 = vmul.f32 1.442695, %v3062_v44  ;;  %v3054_v51 = vpop.xlane.xlu0 %3053 }
 0x50d   : > { %v3060_v30 = vsub.f32 %v3034_v18, %v3054_v51 }
 0x50e   : > { %3930 = vpow2.f32 %v3065_v28 }
 0x50f   : > { %v3063_v31 = vsel %vm3044_vm4, %v3060_v30, 0.0 }
 0x510   : > { %v3067_v32 = vmul.f32 1.442695, %v3063_v31  ;;  %v3058_v2 = vpop.xlane.xlu1 %3057 }
 0x511   : > { %v3061_v34 = vsub.f32 %v3039_v25, %v3058_v2 }
 0x512   : > { %3932 = vpow2.f32 %v3067_v32 }
 0x513   : > { %v3064_v35 = vsel %vm3044_vm4, %v3061_v34, 0.0 }
 0x514   : > { %v3069_v36 = vmul.f32 1.442695, %v3064_v35 }
 0x516   : > { %3934 = vpow2.f32 %v3069_v36 }
 0x518   : > { %v3931_v37 = vpop.eup %3930 }
 0x519   : > { %v3071_v41 = vsel %vm3044_vm4, %v3931_v37, 0.0 }
 0x51a   : > { %v3074_v9 = vsel %vm3048_vm7, %v3071_v41, 0.0 }
 0x51b   : > { %3075 = vadd.xlane.f32.xlu1 %v3074_v9 }
 0x51c   : > { %v3933_v43 = vpop.eup %3932 }
 0x51d   : > { %v3072_v45 = vsel %vm3044_vm4, %v3933_v43, 0.0 }
 0x51e   : > { %v3077_v46 = vsel %vm3048_vm7, %v3072_v45, 0.0 }
 0x51f   : > { %3078 = vadd.xlane.f32.xlu0 %v3077_v46 }
 0x520   : > { %v3935_v14 = vpop.eup %3934 }
 0x521   : > { %v3073_v47 = vsel %vm3044_vm4, %v3935_v14, 0.0 }
 0x522   : > { %v3080_v48 = vsel %vm3055_vm1, %v3073_v47, 0.0 }
 0x523   : > { %3081 = vadd.xlane.f32.xlu1 %v3080_v48 }
 0x5a8   : > { %v3076_v40 = vpop.xlane.xlu1 %3075 }
 0x5a9   : > { %3936 = vrcp.f32 %v3076_v40 }
 0x5ac   : > { %v3079_v49 = vpop.xlane.xlu0 %3078 }
 0x5ad   : > { %3938 = vrcp.f32 %v3079_v49 }
 0x5b0   : > { %v3082_v50 = vpop.xlane.xlu1 %3081 }
 0x5b1   : > { %3940 = vrcp.f32 %v3082_v50 }
 0x5b3   : > { %v3937_v52 = vpop.eup %3936 }
 0x5b4   : > { %v3084_v38 = vmul.f32 %v3937_v52, %v3931_v37 }
 0x5b6   : > { %v3089_v42 = vsel %vm3044_vm4, %v3084_v38, %v3029_v39 }
 0x5b7   : > { %v3939_v53 = vpop.eup %3938  ;;  %3092 = vst.msk [vmem:[%s413_s18] sm:$0xff] %vm3048_vm7, %v3089_v42 }
 0x5b8   : > { %v3086_v54 = vmul.f32 %v3939_v53, %v3933_v43 }
 0x5ba   : > { %v3090_v3 = vsel %vm3044_vm4, %v3086_v54, %v3034_v18 }
 0x5bb   : > { %v3941_v55 = vpop.eup %3940  ;;  %3093 = vst.msk [vmem:[%s413_s18 + $0x8] sm:$0xff] %vm3048_vm7, %v3090_v3 }
 0x5bc   : > { %v3088_v56 = vmul.f32 %v3941_v55, %v3935_v14 }
 0x5be   : > { %v3091_v57 = vsel %vm3044_vm4, %v3088_v56, %v3039_v25 }
 0x5bf   : > { %3094 = vst.msk [vmem:[%s413_s18 + $0x10] sm:$0x7] %vm3055_vm1, %v3091_v57 }
 0x5c0 PF: > { %s22_s21 = sadd.s32 1, %s3948_s21  }
 0x5c1   : > { %p19_p4 = scmp.ge.s32.totalorder %s22_s21, 4  }
 0x5c3   :  { %21 = sbr.rel (!%p19_p4) target bundleno = 1 (0x1), region = 141 }

</bundles_post_ra>
